<compile_context>
chip_gen: v6e
topology: v6e:2x2x1
jax: 0.10.0
libtpu: 0.0.40
codegen_flags: <defaults>
</compile_context>

<pallas_src>
import jax
import jax.numpy as jnp
from jax.experimental import pallas as pl
from jax.experimental.pallas import tpu as pltpu


def _round_up(x, m):
    return ((x + m - 1) // m) * m


def _preferred_grid_steps():
    """Grid-step target: >=2 on multi-TensorCore chips (v7x) so the 'parallel'
    batch axis shards across both cores; 1 (fewest steps) on single-TC chips
    (v5e / v6e) where per-step overhead dominates this tiny network."""
    try:
        kind = jax.devices()[0].device_kind.lower()
    except Exception:
        return 2
    return 2 if "7" in kind else 1


def critic_kernel(xT_ref, w1_ref, w2_ref, aux_ref, qT_ref):
    # aux columns: 0 = b1, 1 = b2, 2 = fc3 weight (as a column), 3 = b3.
    b1 = aux_ref[:, 0:1]          # (H, 1) f32
    b2 = aux_ref[:, 1:2]          # (H, 1) f32
    w3 = aux_ref[:, 2:3]          # (H, 1) f32
    b3 = aux_ref[0:1, 3:4]        # (1, 1) f32

    xT = xT_ref[...].astype(jnp.bfloat16)                      # (D_in, TM)

    # fc1 (merged state||action weight) + ReLU; materialize h1 as bf16.
    h1 = jnp.dot(w1_ref[...], xT, preferred_element_type=jnp.float32) + b1
    h1 = jnp.maximum(h1, 0.0).astype(jnp.bfloat16)              # (H, TM) bf16

    # fc2 + ReLU (the dominant matmul), f32 accumulate / bias / ReLU.
    h2 = jnp.dot(w2_ref[...], h1, preferred_element_type=jnp.float32) + b2
    h2 = jnp.maximum(h2, 0.0)                                   # (H, TM) f32

    # fc3 (single output unit): VPU multiply + sublane reduction produces the
    # q values directly in lane-dense (1, TM) form -> unmasked full-width store.
    q = jnp.sum(h2 * w3, axis=0, keepdims=True) + b3            # (1, TM) f32
    qT_ref[...] = q.astype(qT_ref.dtype)


def critic_forward(state, action, params, *, tm=None):
    """state: [B, state_dim] f32, action: [B, action_dim] f32 -> q: [B, 1] f32."""
    w1, b1, w2, b2, w3, b3 = params      # native PyTorch [out, in] layout, f32
    B = state.shape[0]
    d_in = state.shape[1] + action.shape[1]
    H = w1.shape[0]

    # ---- tiny wrapper-side packing (one-time XLA ops, a few KB) -------------
    x = jnp.concatenate([state, action], axis=-1)               # [B, d_in] f32
    w1b = w1.astype(jnp.bfloat16)                                # [H, d_in]
    w2b = w2.astype(jnp.bfloat16)                                # [H, H]
    aux = jnp.stack(
        [b1, b2, w3[0, :], jnp.full((H,), b3.reshape(()), jnp.float32)],
        axis=1).astype(jnp.float32)                              # [H, 4]

    # ---- batch tiling (batch is the LANE axis -> 128-aligned tiles) ---------
    if tm is None:
        tm = pl.cdiv(B, _preferred_grid_steps())
    tm = min(max(128, _round_up(tm, 128)), 2048)
    Bp = _round_up(B, tm)
    if Bp != B:
        x = jnp.pad(x, ((0, Bp - B), (0, 0)))
    xT = x.T                                                     # [d_in, Bp]
    grid = (Bp // tm,)

    flops = 2 * Bp * (d_in * H + H * H + H)
    bytes_accessed = (xT.size * 4 + w1b.size * 2 + w2b.size * 2
                      + aux.size * 4 + Bp * 4)

    qT = pl.pallas_call(
        critic_kernel,
        out_shape=jax.ShapeDtypeStruct((1, Bp), jnp.float32),
        grid=grid,
        in_specs=[
            pl.BlockSpec((d_in, tm), lambda i: (0, i)),    # activations tile
            pl.BlockSpec((H, d_in), lambda i: (0, 0)),     # fc1 weight (resident)
            pl.BlockSpec((H, H), lambda i: (0, 0)),        # fc2 weight (resident)
            pl.BlockSpec((H, 4), lambda i: (0, 0)),        # [b1 | b2 | w3 | b3]
        ],
        out_specs=pl.BlockSpec((1, tm), lambda i: (0, i)),  # lane-dense q row
        compiler_params=pltpu.CompilerParams(
            dimension_semantics=("parallel",)),
        cost_estimate=pl.CostEstimate(
            flops=flops, transcendentals=0, bytes_accessed=bytes_accessed),
    )(xT, w1b, w2b, aux)

    return qT[0, :B].reshape(B, 1)


def init_params(key, state_dim, action_dim, hidden_dim=256):
    """nn.Linear-style init (U[-1/sqrt(fan_in), +1/sqrt(fan_in)]), PyTorch
    [out_features, in_features] weight layout."""
    def linear(k, fan_in, fan_out):
        kw, kb = jax.random.split(k)
        bound = 1.0 / jnp.sqrt(jnp.float32(fan_in))
        w = jax.random.uniform(kw, (fan_out, fan_in), jnp.float32, -bound, bound)
        b = jax.random.uniform(kb, (fan_out,), jnp.float32, -bound, bound)
        return w, b

    k1, k2, k3 = jax.random.split(key, 3)
    w1, b1 = linear(k1, state_dim + action_dim, hidden_dim)
    w2, b2 = linear(k2, hidden_dim, hidden_dim)
    w3, b3 = linear(k3, hidden_dim, 1)
    return (w1, b1, w2, b2, w3, b3)


if __name__ == "__main__":
    batch, state_dim, action_dim, hidden_dim = 500, 12, 4, 256

    key = jax.random.PRNGKey(0)
    k_params, k_state, k_action = jax.random.split(key, 3)

    params = init_params(k_params, state_dim, action_dim, hidden_dim)
    state = jax.random.normal(k_state, (batch, state_dim), jnp.float32)
    action = jax.random.normal(k_action, (batch, action_dim), jnp.float32)

    q = critic_forward(state, action, params)
    jax.block_until_ready(q)
    assert q.shape == (batch, 1)

    w1, b1, w2, b2, w3, b3 = params
    x = jnp.concatenate([state, action], axis=-1)

    # (a) true f32 PyTorch-equivalent reference (bf16 MXU operands -> ~1e-2 dev)
    h1_f = jnp.maximum(x @ w1.T + b1, 0.0)
    h2_f = jnp.maximum(h1_f @ w2.T + b2, 0.0)
    q_f32 = h2_f @ w3.T + b3
    assert jnp.allclose(q, q_f32, atol=3e-2, rtol=3e-2), "mismatch vs f32 ref"

    # (b) bf16-operand / f32-accumulate mimic of the kernel's exact math
    f32, bf16 = jnp.float32, jnp.bfloat16
    xb = x.astype(bf16)
    h1_m = jnp.maximum(
        jnp.dot(xb, w1.astype(bf16).T, preferred_element_type=f32) + b1, 0.0)
    h2_m = jnp.maximum(
        jnp.dot(h1_m.astype(bf16), w2.astype(bf16).T,
                preferred_element_type=f32) + b2, 0.0)
    q_m = jnp.sum(h2_m * w3[0, :], axis=-1, keepdims=True) + b3
    assert jnp.allclose(q, q_m, atol=2e-3, rtol=2e-3), "mismatch vs bf16 mimic"

    # small-batch / padding path (B not a multiple of the lane tile)
    q_small = critic_forward(state[:7], action[:7], params)
    jax.block_until_ready(q_small)
    assert q_small.shape == (7, 1)
    assert jnp.allclose(q_small, q_f32[:7], atol=3e-2, rtol=3e-2), "small-B mismatch"

    print("KERNEL_OK")
</pallas_src>

<mosaic_0001>
module attributes {stable_mosaic.version = 11 : i64} {
  func.func @critic_kernel(%arg0: i32, %arg1: memref<16x512xf32, #tpu.memory_space<vmem>>, %arg2: memref<256x16xbf16, #tpu.memory_space<vmem>>, %arg3: memref<256x256xbf16, #tpu.memory_space<vmem>>, %arg4: memref<256x4xf32, #tpu.memory_space<vmem>>, %arg5: memref<1x512xf32, #tpu.memory_space<vmem>>) attributes {dimension_semantics = [#tpu.dimension_semantics<parallel>], iteration_bounds = array<i64: 1>, scalar_prefetch = 0 : i64, scratch_operands = 0 : i64, tpu.core_type = #tpu.core_type<tc>, window_params = [{transform_indices = @transform_0, window_bounds = array<i64: 16, 512>}, {pipeline_mode = #tpu.pipeline_mode<synchronous>, transform_indices = @transform_1, window_bounds = array<i64: 256, 16>}, {pipeline_mode = #tpu.pipeline_mode<synchronous>, transform_indices = @transform_2, window_bounds = array<i64: 256, 256>}, {pipeline_mode = #tpu.pipeline_mode<synchronous>, transform_indices = @transform_3, window_bounds = array<i64: 256, 4>}, {transform_indices = @transform_4, window_bounds = array<i64: 1, 512>}]} {
    %c0 = arith.constant 0 : index
    %c0_0 = arith.constant 0 : index
    %0 = vector.load %arg4[%c0, %c0_0] : memref<256x4xf32, #tpu.memory_space<vmem>>, vector<256x1xf32>
    %c0_1 = arith.constant 0 : index
    %c1 = arith.constant 1 : index
    %1 = vector.load %arg4[%c0_1, %c1] : memref<256x4xf32, #tpu.memory_space<vmem>>, vector<256x1xf32>
    %c0_2 = arith.constant 0 : index
    %c2 = arith.constant 2 : index
    %2 = vector.load %arg4[%c0_2, %c2] : memref<256x4xf32, #tpu.memory_space<vmem>>, vector<256x1xf32>
    %c0_3 = arith.constant 0 : index
    %c3 = arith.constant 3 : index
    %3 = vector.load %arg4[%c0_3, %c3] : memref<256x4xf32, #tpu.memory_space<vmem>>, vector<1x1xf32>
    %c0_4 = arith.constant 0 : index
    %c0_5 = arith.constant 0 : index
    %4 = vector.load %arg1[%c0_4, %c0_5] : memref<16x512xf32, #tpu.memory_space<vmem>>, vector<16x512xf32>
    %5 = arith.truncf %4 : vector<16x512xf32> to vector<16x512xbf16>
    %c0_6 = arith.constant 0 : index
    %c0_7 = arith.constant 0 : index
    %6 = vector.load %arg2[%c0_6, %c0_7] : memref<256x16xbf16, #tpu.memory_space<vmem>>, vector<256x16xbf16>
    %cst = arith.constant dense<0.000000e+00> : vector<256x512xf32>
    %7 = tpu.matmul %6, %5, %cst {dimension_numbers = #tpu.dot_dimension_numbers<[1], [0], [0], [1], [0, 0, 1, 1], [], []>} : vector<256x16xbf16>, vector<16x512xbf16>, vector<256x512xf32> -> vector<256x512xf32>
    %8 = vector.broadcast %0 : vector<256x1xf32> to vector<256x512xf32>
    %9 = arith.addf %7, %8 : vector<256x512xf32>
    %cst_8 = arith.constant 0.000000e+00 : f32
    %10 = vector.broadcast %cst_8 : f32 to vector<256x512xf32>
    %11 = arith.maximumf %9, %10 : vector<256x512xf32>
    %12 = arith.truncf %11 : vector<256x512xf32> to vector<256x512xbf16>
    %c0_9 = arith.constant 0 : index
    %c0_10 = arith.constant 0 : index
    %13 = vector.load %arg3[%c0_9, %c0_10] : memref<256x256xbf16, #tpu.memory_space<vmem>>, vector<256x256xbf16>
    %cst_11 = arith.constant dense<0.000000e+00> : vector<256x512xf32>
    %14 = tpu.matmul %13, %12, %cst_11 {dimension_numbers = #tpu.dot_dimension_numbers<[1], [0], [0], [1], [0, 0, 1, 1], [], []>} : vector<256x256xbf16>, vector<256x512xbf16>, vector<256x512xf32> -> vector<256x512xf32>
    %15 = vector.broadcast %1 : vector<256x1xf32> to vector<256x512xf32>
    %16 = arith.addf %14, %15 : vector<256x512xf32>
    %cst_12 = arith.constant 0.000000e+00 : f32
    %17 = vector.broadcast %cst_12 : f32 to vector<256x512xf32>
    %18 = arith.maximumf %16, %17 : vector<256x512xf32>
    %19 = vector.broadcast %2 : vector<256x1xf32> to vector<256x512xf32>
    %20 = arith.mulf %18, %19 : vector<256x512xf32>
    %cst_13 = arith.constant dense<0.000000e+00> : vector<512xf32>
    %21 = vector.multi_reduction <add>, %20, %cst_13 [0] : vector<256x512xf32> to vector<512xf32>
    %22 = vector.shape_cast %21 : vector<512xf32> to vector<1x512xf32>
    %23 = vector.broadcast %3 : vector<1x1xf32> to vector<1x512xf32>
    %24 = arith.addf %22, %23 : vector<1x512xf32>
    %c0_14 = arith.constant 0 : index
    %c0_15 = arith.constant 0 : index
    %25 = vector.load %arg5[%c0_14, %c0_15] : memref<1x512xf32, #tpu.memory_space<vmem>>, vector<1x512xf32>
    tpu.vector_store %arg5[%c0_14, %c0_15], %24 {strides = array<i32>} : memref<1x512xf32, #tpu.memory_space<vmem>>, vector<1x512xf32>,
    return
  }
  func.func @transform_0(%arg0: i32) -> (i32, i32) {
    %c0_i32 = arith.constant 0 : i32
    %c0_i32_0 = arith.constant 0 : i32
    return %c0_i32, %arg0 : i32, i32
  }
  func.func @transform_1(%arg0: i32) -> (i32, i32) {
    %c0_i32 = arith.constant 0 : i32
    %c0_i32_0 = arith.constant 0 : i32
    %c0_i32_1 = arith.constant 0 : i32
    return %c0_i32, %c0_i32_0 : i32, i32
  }
  func.func @transform_2(%arg0: i32) -> (i32, i32) {
    %c0_i32 = arith.constant 0 : i32
    %c0_i32_0 = arith.constant 0 : i32
    %c0_i32_1 = arith.constant 0 : i32
    return %c0_i32, %c0_i32_0 : i32, i32
  }
  func.func @transform_3(%arg0: i32) -> (i32, i32) {
    %c0_i32 = arith.constant 0 : i32
    %c0_i32_0 = arith.constant 0 : i32
    %c0_i32_1 = arith.constant 0 : i32
    return %c0_i32, %c0_i32_0 : i32, i32
  }
  func.func @transform_4(%arg0: i32) -> (i32, i32) {
    %c0_i32 = arith.constant 0 : i32
    %c0_i32_0 = arith.constant 0 : i32
    return %c0_i32, %arg0 : i32, i32
  }
}

</mosaic_0001>

<bundles_post_ra>
// kernel: tpu_custom_call.1
= control target key start
LH: loop header
LB: loop body
LE: loop exit
PB: predicated region body
PF: predicated region fallthrough
CT: control target
= control target key end

     0   :  { %v2461_v7 = vmov 0   ;;  %vm336_vm0 = vcmask 130048   ;;  %s3683_s0 = inlined_call_operand.vmem [shape: f32[16,512], index: 0, kind: input, shape index: {}]   ;;  %s3684_s1 = inlined_call_operand.vmem [shape: bf16[256,16], index: 1, kind: input, shape index: {}]   ;;  %s3685_s2 = inlined_call_operand.vmem [shape: bf16[256,256], index: 2, kind: input, shape index: {}]   ;;  %s3686_s3 = inlined_call_operand.vmem [shape: f32[256,4], index: 3, kind: input, shape index: {}]   ;;  %s3687_s4 = inlined_call_operand.hbm [shape: f32[1,512], index: 4, kind: output, shape index: {}]  }
   0x1   :  { %v53_v0 = vld [vmem:[%s3683_s0 + $0x8] sm:$0xff]  ;;  %v55_v2 = vld [vmem:[%s3683_s0 + $0x18] sm:$0xff]  ;;  %v52_v5 = vld [vmem:[%s3683_s0] sm:$0xff]  ;;  %417 = vmatprep.mubr.bf16.mxu0 %v2461_v7  ;;  %610 = vmatprep.mubr.bf16.mxu1 %v2461_v7 }
   0x2   :  { %v57_v1 = vld [vmem:[%s3683_s0 + $0x28] sm:$0xff]  ;;  %v59_v4 = vld [vmem:[%s3683_s0 + $0x38] sm:$0xff]  ;;  %v56_v6 = vld [vmem:[%s3683_s0 + $0x20] sm:$0xff]  ;;  %2344 = vset.pattern.permute.xlu0 %v2461_v7  ;;  %2345 = vset.pattern.permute.xlu1 %v2461_v7 }
   0x3   :  { %v61_v3 = vpack.c.bf16 %v57_v1, %v53_v0  ;;  %v63_v8 = vpack.c.bf16 %v59_v4, %v55_v2  ;;  %v60_v9 = vpack.c.bf16 %v56_v6, %v52_v5  ;;  %v54_v10 = vld [vmem:[%s3683_s0 + $0x10] sm:$0xff]  ;;  %v2355_v13 = vld [vmem:[%s3684_s1] sm:$0xff]   ;;  %v34_v16 = vld [vmem:[%s3686_s3 + $0x78] sm:$0xff] }
   0x4   :  { %v58_v11 = vld [vmem:[%s3683_s0 + $0x30] sm:$0xff]  ;;  %v2536_v15 = vld [vmem:[%s3686_s3 + $0x60] sm:$0xff]  ;;  %v2356_v17 = vld [vmem:[%s3684_s1 + $0x8] sm:$0xff]  }
   0x5   :  { %399 = vmatprep.subr.bf16.mxu0 %v61_v3  ;;  %v62_v12 = vpack.c.bf16 %v58_v11, %v54_v10  ;;  %592 = vmatprep.subr.bf16.mxu1 %v63_v8  ;;  %v2529_v14 = vld [vmem:[%s3686_s3 + $0x70] sm:$0xff]  ;;  %v32_v18 = vld [vmem:[%s3686_s3 + $0x68] sm:$0xff]  ;;  %v30_v20 = vld [vmem:[%s3686_s3 + $0x58] sm:$0xff] }
   0x6   :  { %400 = vmatpush1.bf16.msra.mxu0 %v60_v9  ;;  %3727 = vst [vmem:[#allocation5_spill] sm:$0xff] %v2529_v14  ;;  %168 = vperm.xlu0 %2344, %v2529_v14   ;;  %v2551_v19 = vld [vmem:[%s3686_s3 + $0x50] sm:$0xff]  ;;  %v2567_v22 = vld [vmem:[%s3686_s3 + $0x40] sm:$0xff]  ;;  %v28_v23 = vld [vmem:[%s3686_s3 + $0x48] sm:$0xff] }
   0x7   :  { %593 = vmatpush1.bf16.msra.mxu1 %v62_v12  ;;  %158 = vperm.xlu1 %2345, %v2536_v15   ;;  %v2357_v21 = vld [vmem:[%s3684_s1 + $0x10] sm:$0xff]   ;;  %v26_v25 = vld [vmem:[%s3686_s3 + $0x38] sm:$0xff]  ;;  %v2589_v26 = vld [vmem:[%s3686_s3 + $0x20] sm:$0xff] }
   0x8   :  { %v2576_v24 = vld [vmem:[%s3686_s3 + $0x30] sm:$0xff]  ;;  %v2358_v27 = vld [vmem:[%s3684_s1 + $0x18] sm:$0xff]   ;;  %v24_v28 = vld [vmem:[%s3686_s3 + $0x28] sm:$0xff] }
   0x9   :  { %2274 = vmatmul.mubr.msk.bf16.vlgmr.msra.gmra.mxu0 %vm336_vm0, %v2355_v13  ;;  %v2600_v29 = vld [vmem:[%s3686_s3 + $0x10] sm:$0xff]  ;;  %v22_v30 = vld [vmem:[%s3686_s3 + $0x18] sm:$0xff]  ;;  %v19_v31 = vld [vmem:[%s3686_s3] sm:$0xff] }
   0xa   :  { %2290 = vmatmul.mubr.msk.bf16.vlgmr.msra.gmra.mxu1 %vm336_vm0, %v2355_v13  ;;  %427 = vmatprep.mubr.bf16.mxu0 %v2461_v7  ;;  %v2359_v32 = vld [vmem:[%s3684_s1 + $0x20] sm:$0xff]   ;;  %v2620_v33 = vld [vmem:[%s3686_s3 + $0x8] sm:$0xff]  ;;  %v49_v34 = vld [vmem:[%s3686_s3 + $0xf0] sm:$0xff] }
   0xb   :  { %620 = vmatprep.mubr.bf16.mxu1 %v2461_v7  ;;  %173 = vperm.xlu0 %2344, %v34_v16   ;;  %v50_v35 = vld [vmem:[%s3686_s3 + $0xf8] sm:$0xff] }
   0xc   :  { %163 = vperm.xlu1 %2345, %v32_v18  }
   0xf   :  { %148 = vperm.xlu0 %2344, %v2551_v19  }
  0x10   :  { %153 = vperm.xlu1 %2345, %v30_v20  }
  0x11   :  { %2275 = vmatmul.mubr.msk.bf16.gmra.mxu0 %vm336_vm0, %v2356_v17 }
  0x12   :  { %2291 = vmatmul.mubr.msk.bf16.gmra.mxu1 %vm336_vm0, %v2356_v17  ;;  %437 = vmatprep.mubr.bf16.mxu0 %v2461_v7 }
  0x13   :  { %630 = vmatprep.mubr.bf16.mxu1 %v2461_v7  ;;  %138 = vperm.xlu0 %2344, %v2567_v22  }
  0x14   :  { %143 = vperm.xlu1 %2345, %v28_v23  }
  0x17   :  { %128 = vperm.xlu0 %2344, %v2576_v24  }
  0x18   :  { %133 = vperm.xlu1 %2345, %v26_v25  }
  0x19   :  { %2276 = vmatmul.mubr.msk.bf16.gmra.mxu0 %vm336_vm0, %v2357_v21 }
  0x1a   :  { %2292 = vmatmul.mubr.msk.bf16.gmra.mxu1 %vm336_vm0, %v2357_v21  ;;  %447 = vmatprep.mubr.bf16.mxu0 %v2461_v7 }
  0x1b   :  { %640 = vmatprep.mubr.bf16.mxu1 %v2461_v7  ;;  %118 = vperm.xlu0 %2344, %v2589_v26  }
  0x1c   :  { %123 = vperm.xlu1 %2345, %v24_v28  }
  0x1f   :  { %108 = vperm.xlu0 %2344, %v2600_v29  }
  0x20   :  { %113 = vperm.xlu1 %2345, %v22_v30  }
  0x21   :  { %2277 = vmatmul.mubr.msk.bf16.gmra.mxu0 %vm336_vm0, %v2358_v27 }
  0x22   :  { %2293 = vmatmul.mubr.msk.bf16.gmra.mxu1 %vm336_vm0, %v2358_v27  ;;  %457 = vmatprep.mubr.bf16.mxu0 %v2461_v7 }
  0x23   :  { %650 = vmatprep.mubr.bf16.mxu1 %v2461_v7  ;;  %98 = vperm.xlu0 %2344, %v19_v31  }
  0x24   :  { %103 = vperm.xlu1 %2345, %v2620_v33  }
  0x29   :  { %2278 = vmatmul.mubr.msk.bf16.gmra.mxu0 %vm336_vm0, %v2359_v32 }
  0x2a   :  { %2294 = vmatmul.mubr.msk.bf16.gmra.mxu1 %vm336_vm0, %v2359_v32  ;;  %467 = vmatprep.mubr.bf16.mxu0 %v2461_v7 }
  0x2b   :  { %9 = vsyncpa [#allocation3], 0  ;;  %660 = vmatprep.mubr.bf16.mxu1 %v2461_v7  ;;  %248 = vperm.xlu0 %2344, %v49_v34   ;;  %v47_v36 = vld [vmem:[%s3686_s3 + $0xe0] sm:$0xff]  ;;  %v2360_v37 = vld [vmem:[%s3684_s1 + $0x28] sm:$0xff]  }
  0x2c   :  { %253 = vperm.xlu1 %2345, %v50_v35   ;;  %v48_v38 = vld [vmem:[%s3686_s3 + $0xe8] sm:$0xff]  ;;  %v2645_v39 = vld [vmem:[%s3686_s3 + $0xd0] sm:$0xff]  ;;  %v2651_v40 = vld [vmem:[%s3686_s3 + $0xd8] sm:$0xff] }
  0x2d   :  { %3728 = vst [vmem:[#allocation6_spill] sm:$0xff] %v2645_v39  ;;  %3729 = vst [vmem:[#allocation7_spill] sm:$0xff] %v2651_v40  ;;  %v2660_v41 = vld [vmem:[%s3686_s3 + $0xc0] sm:$0xff]  ;;  %v2361_v42 = vld [vmem:[%s3684_s1 + $0x30] sm:$0xff]  }
  0x2e   :  { %3730 = vst [vmem:[#allocation8_spill] sm:$0xff] %v2660_v41  ;;  %v44_v43 = vld [vmem:[%s3686_s3 + $0xc8] sm:$0xff]  ;;  %v2673_v44 = vld [vmem:[%s3686_s3 + $0xb0] sm:$0xff]  ;;  %v42_v45 = vld [vmem:[%s3686_s3 + $0xb8] sm:$0xff] }
  0x2f   :  { %238 = vperm.xlu0 %2344, %v47_v36   ;;  %3731 = vst [vmem:[#allocation9_spill] sm:$0xff] %v2673_v44  ;;  %v2686_v46 = vld [vmem:[%s3686_s3 + $0xa0] sm:$0xff]  ;;  %v2362_v47 = vld [vmem:[%s3684_s1 + $0x38] sm:$0xff]   ;;  %v40_v48 = vld [vmem:[%s3686_s3 + $0xa8] sm:$0xff] }
  0x30   :  { %243 = vperm.xlu1 %2345, %v48_v38   ;;  %3732 = vst [vmem:[#allocation10_spill] sm:$0xff] %v2686_v46  ;;  %v2698_v49 = vld [vmem:[%s3686_s3 + $0x90] sm:$0xff]  ;;  %v38_v50 = vld [vmem:[%s3686_s3 + $0x98] sm:$0xff]  ;;  %v2711_v51 = vld [vmem:[%s3686_s3 + $0x80] sm:$0xff] }
  0x31   :  { %2279 = vmatmul.mubr.msk.bf16.gmra.mxu0 %vm336_vm0, %v2360_v37  ;;  %3733 = vst [vmem:[#allocation11_spill] sm:$0xff] %v2698_v49  ;;  %3734 = vst [vmem:[#allocation12_spill] sm:$0xff] %v2711_v51  ;;  %v2363_v52 = vld [vmem:[%s3684_s1 + $0x40] sm:$0xff]   ;;  %v36_v53 = vld [vmem:[%s3686_s3 + $0x88] sm:$0xff] }
  0x32   :  { %2295 = vmatmul.mubr.msk.bf16.gmra.mxu1 %vm336_vm0, %v2360_v37  ;;  %477 = vmatprep.mubr.bf16.mxu0 %v2461_v7  ;;  %v2364_v54 = vld [vmem:[%s3684_s1 + $0x48] sm:$0xff]   ;;  %v2365_v55 = vld [vmem:[%s3684_s1 + $0x50] sm:$0xff]   ;;  %v2366_v56 = vld [vmem:[%s3684_s1 + $0x58] sm:$0xff]  }
  0x33   :  { %670 = vmatprep.mubr.bf16.mxu1 %v2461_v7  ;;  %228 = vperm.xlu0 %2344, %v2645_v39   ;;  %v2367_v57 = vld [vmem:[%s3684_s1 + $0x60] sm:$0xff]   ;;  %v2368_v58 = vld [vmem:[%s3684_s1 + $0x68] sm:$0xff]   ;;  %v2369_v59 = vld [vmem:[%s3684_s1 + $0x70] sm:$0xff]  }
  0x34   :  { %233 = vperm.xlu1 %2345, %v2651_v40   ;;  %v2370_v60 = vld [vmem:[%s3684_s1 + $0x78] sm:$0xff]  }
  0x37   :  { %218 = vperm.xlu0 %2344, %v2660_v41  }
  0x38   :  { %223 = vperm.xlu1 %2345, %v44_v43  }
  0x39   :  { %2280 = vmatmul.mubr.msk.bf16.gmra.mxu0 %vm336_vm0, %v2361_v42 }
  0x3a   :  { %2296 = vmatmul.mubr.msk.bf16.gmra.mxu1 %vm336_vm0, %v2361_v42  ;;  %487 = vmatprep.mubr.bf16.mxu0 %v2461_v7 }
  0x3b   :  { %680 = vmatprep.mubr.bf16.mxu1 %v2461_v7  ;;  %208 = vperm.xlu0 %2344, %v2673_v44  }
  0x3c   :  { %213 = vperm.xlu1 %2345, %v42_v45  }
  0x3f   :  { %198 = vperm.xlu0 %2344, %v2686_v46  }
  0x40   :  { %203 = vperm.xlu1 %2345, %v40_v48  }
  0x41   :  { %2281 = vmatmul.mubr.msk.bf16.gmra.mxu0 %vm336_vm0, %v2362_v47 }
  0x42   :  { %2297 = vmatmul.mubr.msk.bf16.gmra.mxu1 %vm336_vm0, %v2362_v47  ;;  %497 = vmatprep.mubr.bf16.mxu0 %v2461_v7 }
  0x43   :  { %690 = vmatprep.mubr.bf16.mxu1 %v2461_v7  ;;  %188 = vperm.xlu0 %2344, %v2698_v49  }
  0x44   :  { %193 = vperm.xlu1 %2345, %v38_v50  }
  0x47   :  { %178 = vperm.xlu0 %2344, %v2711_v51  }
  0x48   :  { %183 = vperm.xlu1 %2345, %v36_v53  }
  0x49   :  { %2282 = vmatmul.mubr.msk.bf16.gmra.mxu0 %vm336_vm0, %v2363_v52 }
  0x4a   :  { %2298 = vmatmul.mubr.msk.bf16.gmra.mxu1 %vm336_vm0, %v2363_v52  ;;  %507 = vmatprep.mubr.bf16.mxu0 %v2461_v7 }
  0x4b   :  { %700 = vmatprep.mubr.bf16.mxu1 %v2461_v7 }
  0x51   :  { %2283 = vmatmul.mubr.msk.bf16.gmra.mxu0 %vm336_vm0, %v2364_v54 }
  0x52   :  { %2299 = vmatmul.mubr.msk.bf16.gmra.mxu1 %vm336_vm0, %v2364_v54  ;;  %517 = vmatprep.mubr.bf16.mxu0 %v2461_v7 }
  0x53   :  { %710 = vmatprep.mubr.bf16.mxu1 %v2461_v7 }
  0x59   :  { %2284 = vmatmul.mubr.msk.bf16.gmra.mxu0 %vm336_vm0, %v2365_v55 }
  0x5a   :  { %2300 = vmatmul.mubr.msk.bf16.gmra.mxu1 %vm336_vm0, %v2365_v55  ;;  %527 = vmatprep.mubr.bf16.mxu0 %v2461_v7 }
  0x5b   :  { %720 = vmatprep.mubr.bf16.mxu1 %v2461_v7 }
  0x61   :  { %2285 = vmatmul.mubr.msk.bf16.gmra.mxu0 %vm336_vm0, %v2366_v56 }
  0x62   :  { %2301 = vmatmul.mubr.msk.bf16.gmra.mxu1 %vm336_vm0, %v2366_v56  ;;  %537 = vmatprep.mubr.bf16.mxu0 %v2461_v7 }
  0x63   :  { %730 = vmatprep.mubr.bf16.mxu1 %v2461_v7 }
  0x69   :  { %2286 = vmatmul.mubr.msk.bf16.gmra.mxu0 %vm336_vm0, %v2367_v57 }
  0x6a   :  { %2302 = vmatmul.mubr.msk.bf16.gmra.mxu1 %vm336_vm0, %v2367_v57  ;;  %547 = vmatprep.mubr.bf16.mxu0 %v2461_v7 }
  0x6b   :  { %740 = vmatprep.mubr.bf16.mxu1 %v2461_v7 }
  0x71   :  { %2287 = vmatmul.mubr.msk.bf16.gmra.mxu0 %vm336_vm0, %v2368_v58 }
  0x72   :  { %2303 = vmatmul.mubr.msk.bf16.gmra.mxu1 %vm336_vm0, %v2368_v58  ;;  %557 = vmatprep.mubr.bf16.mxu0 %v2461_v7 }
  0x73   :  { %750 = vmatprep.mubr.bf16.mxu1 %v2461_v7 }
  0x79   :  { %2288 = vmatmul.mubr.msk.bf16.gmra.mxu0 %vm336_vm0, %v2369_v59 }
  0x7a   :  { %2304 = vmatmul.mubr.msk.bf16.gmra.mxu1 %vm336_vm0, %v2369_v59  ;;  %567 = vmatprep.mubr.bf16.mxu0 %v2461_v7 }
  0x7b   :  { %760 = vmatprep.mubr.bf16.mxu1 %v2461_v7 }
  0x81   :  { %2289 = vmatmul.mubr.msk.bf16.gmra.mxu0 %vm336_vm0, %v2370_v60  ;;  %v2771_v61 = vpop.permute.xlu0 %168 }
  0x82   :  { %2305 = vmatmul.mubr.msk.bf16.gmra.mxu1 %vm336_vm0, %v2370_v60  ;;  %v2773_v62 = vpop.permute.xlu1 %158 }
  0x86   :  { %v2775_v63 = vpop.permute.xlu0 %173 }
  0x87   :  { %v2777_v0 = vpop.permute.xlu1 %163 }
  0x8a   :  { %v2779_v1 = vpop.permute.xlu0 %148 }
  0x8b   :  { %v2781_v2 = vpop.permute.xlu1 %153 }
  0x8e   :  { %v2783_v3 = vpop.permute.xlu0 %138 }
  0x8f   :  { %v2785_v4 = vpop.permute.xlu1 %143 }
  0x92   :  { %v2787_v5 = vpop.permute.xlu0 %128 }
  0x93   :  { %v2789_v6 = vpop.permute.xlu1 %133 }
  0x96   :  { %v2791_v7 = vpop.permute.xlu0 %118 }
  0x97   :  { %v2793_v8 = vpop.permute.xlu1 %123 }
  0x9a   :  { %v2795_v9 = vpop.permute.xlu0 %108 }
  0x9b   :  { %v2797_v10 = vpop.permute.xlu1 %113 }
  0x9e   :  { %v2799_v12 = vpop.permute.xlu0 %98 }
  0x9f   :  { %3735 = vst [vmem:[#allocation13_spill] sm:$0xff] %v2799_v12  ;;  %v2803_v17 = vpop.permute.xlu1 %103 }
  0xa0   :  { %3737 = vst [vmem:[#allocation15_spill] sm:$0xff] %v2803_v17 }
  0xc9   :  { %v419_v11 = vpop.f32.mrf.mxu0 }
  0xca   :  { %v612_v13 = vpop.f32.mrf.mxu1  ;;  %v420_v18 = vadd.f32 %v419_v11, %v2799_v12 }
  0xcb   :  { %v2801_v16 = vpop.f32.mrf.mxu0  ;;  %v613_v21 = vadd.f32 %v612_v13, %v2799_v12 }
  0xcc   :  { %3736 = vst [vmem:[#allocation14_spill] sm:$0xff] %v2801_v16  ;;  %v2806_v20 = vpop.f32.mrf.mxu1  ;;  %v771_v31 = vmax.f32 %v420_v18, 0.0 }
  0xcd   :  { %3738 = vst [vmem:[#allocation16_spill] sm:$0xff] %v2806_v20  ;;  %v423_v23 = vpop.f32.mrf.mxu0  ;;  %v773_v35 = vmax.f32 %v613_v21, 0.0 }
  0xce   :  { %v616_v25 = vpop.f32.mrf.mxu1  ;;  %v424_v27 = vadd.f32 %v423_v23, %v2803_v17 }
  0xcf   :  { %v617_v28 = vadd.f32 %v616_v25, %v2803_v17  ;;  %v2811_v30 = vpop.f32.mrf.mxu0 }
  0xd0   :  { %v775_v32 = vmax.f32 %v424_v27, 0.0  ;;  %v2813_v34 = vpop.f32.mrf.mxu1 }
  0xd1   :  { %3739 = vst [vmem:[#allocation17_spill] sm:$0xff] %v2813_v34  ;;  %v777_v36 = vmax.f32 %v617_v28, 0.0  ;;  %v429_v37 = vpop.f32.mrf.mxu0  ;;  %v3708_v34 = vmov 1  }
  0xd2   :  { %v622_v38 = vpop.f32.mrf.mxu1  ;;  %v2815_v42 = vpack.c.bf16 %v775_v32, %v771_v31  ;;  %v430_v47 = vadd.f32 %v429_v37, %v2795_v9  ;;  %2346 = vset.pattern.permute.xlu1 %v3708_v34 }
  0xd3   :  { %v431_v43 = vpop.f32.mrf.mxu0  ;;  %v2817_v45 = vpack.c.bf16 %v777_v36, %v773_v35  ;;  %v623_v50 = vadd.f32 %v622_v38, %v2795_v9  ;;  %v2829_v35 = vpop.permute.xlu0 %248  ;;  %1000 = vperm.xlu1 %2346, %v2620_v33  }
  0xd4   :  { %3740 = vst [vmem:[#allocation18_spill] sm:$0xff] %v2815_v42  ;;  %v624_v48 = vpop.f32.mrf.mxu1  ;;  %v779_v57 = vmax.f32 %v430_v47, 0.0  ;;  %3745 = vst [vmem:[#allocation23_spill] sm:$0xff] %v2829_v35  ;;  %v2831_v38 = vpop.permute.xlu1 %253 }
  0xd5   :  { %3741 = vst [vmem:[#allocation19_spill] sm:$0xff] %v2817_v45  ;;  %v433_v52 = vpop.f32.mrf.mxu0  ;;  %v781_v60 = vmax.f32 %v623_v50, 0.0  ;;  %3746 = vst [vmem:[#allocation24_spill] sm:$0xff] %v2831_v38  ;;  %v2373_v38 = vld [vmem:[%s3685_s2 + $0x4] ss:$8 sps:$4 sm:$0xff]  }
  0xd6   :  { %v434_v53 = vadd.f32 %v433_v52, %v2797_v10  ;;  %v626_v54 = vpop.f32.mrf.mxu1  ;;  %1315 = vmatprep.mubr.bf16.mxu0 %v2373_v38  ;;  %1508 = vmatprep.mubr.bf16.mxu1 %v2373_v38  ;;  %v2860_v38 = vadd.f32 %v2811_v30, %v2803_v17 }
  0xd7   :  { %v627_v55 = vadd.f32 %v626_v54, %v2797_v10  ;;  %v435_v56 = vpop.f32.mrf.mxu0  ;;  %v2833_v54 = vpop.permute.xlu0 %238  ;;  %1004 = vperm.xlu1 %2346, %v2600_v29  }
  0xd8   :  { %v783_v58 = vmax.f32 %v434_v53, 0.0  ;;  %v628_v59 = vpop.f32.mrf.mxu1  ;;  %3747 = vst [vmem:[#allocation25_spill] sm:$0xff] %v2833_v54  ;;  %3753 = vst [vmem:[#allocation31_spill] sm:$0xff] %v2860_v38 }
  0xd9   :  { %v785_v11 = vmax.f32 %v627_v55, 0.0  ;;  %v439_v13 = vpop.f32.mrf.mxu0 }
  0xda   :  { %v2823_v18 = vpack.c.bf16 %v783_v58, %v779_v57  ;;  %v2825_v21 = vpop.f32.mrf.mxu1  ;;  %v2835_v58 = vpop.permute.xlu1 %243 }
  0xdb   :  { %3743 = vst [vmem:[#allocation21_spill] sm:$0xff] %v2825_v21  ;;  %v2827_v23 = vpack.c.bf16 %v785_v11, %v781_v60  ;;  %v441_v25 = vpop.f32.mrf.mxu0  ;;  %3748 = vst [vmem:[#allocation26_spill] sm:$0xff] %v2835_v58  ;;  %v2839_v35 = vpop.permute.xlu0 %228  ;;  %v2866_v21 = vadd.f32 %v624_v48, %v2795_v9  ;;  %1012 = vperm.xlu1 %2346, %v2589_v26  }
  0xdc   :  { %3742 = vst [vmem:[#allocation20_spill] sm:$0xff] %v2823_v18  ;;  %v634_v27 = vpop.f32.mrf.mxu1  ;;  %3749 = vst [vmem:[#allocation27_spill] sm:$0xff] %v2839_v35 }
  0xdd   :  { %3744 = vst [vmem:[#allocation22_spill] sm:$0xff] %v2827_v23  ;;  %v443_v28 = vpop.f32.mrf.mxu0  ;;  %3755 = vst [vmem:[#allocation33_spill] sm:$0xff] %v2866_v21 }
  0xde   :  { %v636_v31 = vpop.f32.mrf.mxu1  ;;  %v2846_v23 = vpop.permute.xlu1 %233 }
  0xdf   :  { %v445_v32 = vpop.f32.mrf.mxu0  ;;  %3750 = vst [vmem:[#allocation28_spill] sm:$0xff] %v2846_v23  ;;  %v2850_v44 = vpop.permute.xlu0 %218  ;;  %v2863_v23 = vadd.f32 %v431_v43, %v2795_v9  ;;  %1020 = vperm.xlu1 %2346, %v2576_v24  }
  0xe0   :  { %v638_v36 = vpop.f32.mrf.mxu1  ;;  %3751 = vst [vmem:[#allocation29_spill] sm:$0xff] %v2850_v44  ;;  %v2872_v49 = vadd.f32 %v445_v32, %v2793_v8  ;;  %v2892_v32 = vadd.f32 %v628_v59, %v2797_v10  ;;  %v2915_v59 = vadd.f32 %v636_v31, %v2793_v8  ;;  %v3717_v31 = vmov 2  }
  0xe1   :  { %v449_v37 = vpop.f32.mrf.mxu0  ;;  %3754 = vst [vmem:[#allocation32_spill] sm:$0xff] %v2863_v23  ;;  %v2875_v34 = vadd.f32 %v638_v36, %v2793_v8  ;;  %v2895_v36 = vadd.f32 %v439_v13, %v2791_v7  ;;  %2348 = vset.pattern.permute.xlu0 %v3717_v31 }
  0xe2   :  { %v642_v47 = vpop.f32.mrf.mxu1  ;;  %v2854_v16 = vpop.permute.xlu1 %223  ;;  %3757 = vst [vmem:[#allocation35_spill] sm:$0xff] %v2872_v49  ;;  %v2880_v30 = vadd.f32 %v449_v37, %v2787_v5  ;;  %3762 = vst [vmem:[#allocation40_spill] sm:$0xff] %v2892_v32  ;;  %1802 = vperm.xlu0 %2348, %v2620_v33  }
  0xe3   :  { %v451_v50 = vpop.f32.mrf.mxu0  ;;  %3752 = vst [vmem:[#allocation30_spill] sm:$0xff] %v2854_v16  ;;  %v2869_v16 = vadd.f32 %v435_v56, %v2797_v10  ;;  %3758 = vst [vmem:[#allocation36_spill] sm:$0xff] %v2875_v34  ;;  %v2877_v14 = vpop.permute.xlu0 %208  ;;  %v2912_v10 = vadd.f32 %v443_v28, %v2793_v8  ;;  %1028 = vperm.xlu1 %2346, %v2567_v22  }
  0xe4   :  { %v644_v52 = vpop.f32.mrf.mxu1  ;;  %3759 = vst [vmem:[#allocation37_spill] sm:$0xff] %v2877_v14  ;;  %3760 = vst [vmem:[#allocation38_spill] sm:$0xff] %v2880_v30  ;;  %v2883_v43 = vadd.f32 %v451_v50, %v2787_v5  ;;  %v2898_v14 = vadd.f32 %v441_v25, %v2791_v7 }
  0xe5   :  { %v453_v53 = vpop.f32.mrf.mxu0  ;;  %3756 = vst [vmem:[#allocation34_spill] sm:$0xff] %v2869_v16  ;;  %v2886_v9 = vadd.f32 %v644_v52, %v2787_v5  ;;  %3763 = vst [vmem:[#allocation41_spill] sm:$0xff] %v2895_v36 }
  0xe6   :  { %v646_v55 = vpop.f32.mrf.mxu1  ;;  %v2889_v48 = vadd.f32 %v453_v53, %v2789_v6  ;;  %v2905_v52 = vpop.permute.xlu1 %213  ;;  %v2909_v53 = vadd.f32 %v634_v27, %v2791_v7  ;;  %3766 = vst [vmem:[#allocation44_spill] sm:$0xff] %v2912_v10  ;;  %3767 = vst [vmem:[#allocation45_spill] sm:$0xff] %v2915_v59  ;;  %1814 = vperm.xlu0 %2348, %v2589_v26  }
  0xe7   :  { %v455_v57 = vpop.f32.mrf.mxu0  ;;  %v2901_v37 = vadd.f32 %v646_v55, %v2789_v6  ;;  %3765 = vst [vmem:[#allocation43_spill] sm:$0xff] %v2905_v52  ;;  %v2923_v52 = vadd.f32 %v642_v47, %v2787_v5  ;;  %1036 = vperm.xlu1 %2346, %v2551_v19  }
  0xe8   :  { %v648_v60 = vpop.f32.mrf.mxu1  ;;  %3761 = vst [vmem:[#allocation39_spill] sm:$0xff] %v2889_v48  ;;  %v2918_v13 = vadd.f32 %v455_v57, %v2789_v6 }
  0xe9   :  { %v459_v11 = vpop.f32.mrf.mxu0  ;;  %3764 = vst [vmem:[#allocation42_spill] sm:$0xff] %v2901_v37  ;;  %v2926_v29 = vadd.f32 %v648_v60, %v2789_v6  ;;  %v2939_v6 = vpop.permute.xlu0 %198 }
  0xea   :  { %v2837_v40 = vpop.f32.mrf.mxu1  ;;  %v2934_v38 = vadd.f32 %v459_v11, %v2783_v3  ;;  %3768 = vst [vmem:[#allocation46_spill] sm:$0xff] %v2939_v6  ;;  %v2961_v23 = vpop.permute.xlu1 %203  ;;  %1822 = vperm.xlu0 %2348, %v2576_v24  }
  0xeb   :  { %v461_v45 = vpop.f32.mrf.mxu0  ;;  %3769 = vst [vmem:[#allocation47_spill] sm:$0xff] %v2961_v23  ;;  %1044 = vperm.xlu1 %2346, %v2536_v15  }
  0xec   :  { %v654_v42 = vpop.f32.mrf.mxu1  ;;  %v2937_v5 = vadd.f32 %v461_v45, %v2783_v3 }
  0xed   :  { %v2844_v39 = vpop.f32.mrf.mxu0  ;;  %v2946_v28 = vadd.f32 %v654_v42, %v2783_v3  ;;  %v2999_v34 = vpop.permute.xlu0 %188 }
  0xee   :  { %v2848_v54 = vpop.f32.mrf.mxu1  ;;  %v2981_v33 = vadd.f32 %v2844_v39, %v2785_v4  ;;  %1830 = vperm.xlu0 %2348, %v2567_v22  }
  0xef   :  { %v465_v58 = vpop.f32.mrf.mxu0 }
  0xf0   :  { %v658_v18 = vpop.f32.mrf.mxu1  ;;  %v2949_v57 = vadd.f32 %v465_v58, %v2785_v4 }
  0xf1   :  { %v469_v41 = vpop.f32.mrf.mxu0  ;;  %v2955_v8 = vadd.f32 %v658_v18, %v2785_v4 }
  0xf2   :  { %v2852_v20 = vpop.f32.mrf.mxu1  ;;  %v2958_v6 = vadd.f32 %v469_v41, %v2779_v1  ;;  %1838 = vperm.xlu0 %2348, %v2551_v19   ;;  %v807_v19 = vmax.f32 %v2981_v33, 0.0 }
  0xf3   :  { %v471_v35 = vpop.f32.mrf.mxu0 }
  0xf4   :  { %v664_v12 = vpop.f32.mrf.mxu1  ;;  %v472_v42 = vadd.f32 %v471_v35, %v2779_v1 }
  0xf5   :  { %v473_v46 = vpop.f32.mrf.mxu0  ;;  %v2969_v58 = vadd.f32 %v664_v12, %v2779_v1 }
  0xf6   :  { %v666_v44 = vpop.f32.mrf.mxu1  ;;  %v2972_v18 = vadd.f32 %v473_v46, %v2781_v2  ;;  %1846 = vperm.xlu0 %2348, %v2536_v15  }
  0xf7   :  { %v475_v51 = vpop.f32.mrf.mxu0  ;;  %v2975_v41 = vadd.f32 %v666_v44, %v2781_v2  ;;  %v2990_v44 = vadd.f32 %v2848_v54, %v2785_v4  ;;  %v3015_v4 = vpop.permute.xlu1 %193 }
  0xf8   :  { %v668_v56 = vpop.f32.mrf.mxu1  ;;  %v476_v11 = vadd.f32 %v475_v51, %v2781_v2  ;;  %v2966_v51 = vadd.f32 %v2837_v40, %v2783_v3 }
  0xf9   :  { %v2903_v50 = vpop.f32.mrf.mxu0  ;;  %v2984_v40 = vadd.f32 %v668_v56, %v2781_v2  ;;  %v2997_v2 = vadd.f32 %v2852_v20, %v2779_v1  ;;  %v812_v56 = vmax.f32 %v472_v42, 0.0 }
  0xfa   :  { %v672_v25 = vpop.f32.mrf.mxu1  ;;  %v816_v35 = vmax.f32 %v476_v11, 0.0  ;;  %v3009_v1 = vadd.f32 %v2903_v50, %v2773_v62 }
  0xfb   :  { %v481_v27 = vpop.f32.mrf.mxu0  ;;  %v3012_v20 = vadd.f32 %v672_v25, %v2773_v62 }
  0xfc   :  { %v674_v21 = vpop.f32.mrf.mxu1  ;;  %v482_v23 = vadd.f32 %v481_v27, %v2773_v62  ;;  %v3018_v11 = vpack.c.bf16 %v816_v35, %v812_v56  ;;  %v819_v22 = vmax.f32 %v3009_v1, 0.0 }
  0xfd   :  { %v2941_v47 = vpop.f32.mrf.mxu0  ;;  %v675_v26 = vadd.f32 %v674_v21, %v2773_v62 }
  0xfe   :  { %v676_v55 = vpop.f32.mrf.mxu1  ;;  %v820_v35 = vmax.f32 %v482_v23, 0.0 }
  0xff   :  { %v485_v60 = vpop.f32.mrf.mxu0  ;;  %v822_v17 = vmax.f32 %v675_v26, 0.0  ;;  %v184_v26 = vpop.permute.xlu1 %183 }
 0x100   :  { %v678_v31 = vpop.f32.mrf.mxu1  ;;  %v486_v27 = vadd.f32 %v485_v60, %v2777_v0  ;;  %v484_v60 = vadd.f32 %v2941_v47, %v2777_v0 }
 0x101   :  { %v489_v3 = vpop.f32.mrf.mxu0  ;;  %v679_v36 = vadd.f32 %v678_v31, %v2777_v0  ;;  %v677_v31 = vadd.f32 %v676_v55, %v2777_v0 }
 0x102   :  { %v682_v45 = vpop.f32.mrf.mxu1  ;;  %v490_v25 = vadd.f32 %v489_v3, %v2771_v61  ;;  %v179_v3 = vpop.permute.xlu0 %178  ;;  %v824_v24 = vmax.f32 %v486_v27, 0.0  ;;  %v823_v0 = vmax.f32 %v484_v60, 0.0 }
 0x103   :  { %v491_v46 = vpop.f32.mrf.mxu0  ;;  %v826_v16 = vmax.f32 %v679_v36, 0.0  ;;  %v825_v30 = vmax.f32 %v677_v31, 0.0 }
 0x104   :  { %v684_v12 = vpop.f32.mrf.mxu1  ;;  %v492_v54 = vadd.f32 %v491_v46, %v2771_v61  ;;  %v683_v46 = vadd.f32 %v682_v45, %v2771_v61  ;;  %v924_v36 = vpack.c.bf16 %v824_v24, %v820_v35 }
 0x105   :  { %v493_v42 = vpop.f32.mrf.mxu0  ;;  %v685_v62 = vadd.f32 %v684_v12, %v2771_v61  ;;  %v827_v61 = vmax.f32 %v490_v25, 0.0  ;;  %v926_v60 = vpack.c.bf16 %v826_v16, %v822_v17 }
 0x106   :  { %v494_v39 = vadd.f32 %v493_v42, %v2775_v63  ;;  %v686_v50 = vpop.f32.mrf.mxu1  ;;  %v828_v23 = vmax.f32 %v492_v54, 0.0  ;;  %v829_v55 = vmax.f32 %v683_v46, 0.0 }
 0x107   :  { %v687_v21 = vadd.f32 %v686_v50, %v2775_v63  ;;  %v495_v32 = vpop.f32.mrf.mxu0  ;;  %v830_v45 = vmax.f32 %v685_v62, 0.0 }
 0x108   :  { %v496_v56 = vadd.f32 %v495_v32, %v2775_v63  ;;  %v688_v42 = vpop.f32.mrf.mxu1  ;;  %v831_v49 = vmax.f32 %v494_v39, 0.0 }
 0x109   :  { %v689_v12 = vadd.f32 %v688_v42, %v2775_v63  ;;  %v499_v50 = vpop.f32.mrf.mxu0  ;;  %v833_v37 = vmax.f32 %v687_v21, 0.0 }
 0x10a   :  { %v832_v59 = vmax.f32 %v496_v56, 0.0  ;;  %v692_v47 = vpop.f32.mrf.mxu1  ;;  %v500_v63 = vadd.f32 %v499_v50, %v179_v3  ;;  %v927_v10 = vpack.c.bf16 %v831_v49, %v827_v61  ;;  %v821_v49 = vmax.f32 %v3012_v20, 0.0 }
 0x10b   :  { %v834_v32 = vmax.f32 %v689_v12, 0.0  ;;  %v501_v48 = vpop.f32.mrf.mxu0  ;;  %v693_v54 = vadd.f32 %v692_v47, %v179_v3  ;;  %v929_v25 = vpack.c.bf16 %v833_v37, %v829_v55  ;;  %v3773_v55 = vmax.f32 %v2984_v40, 0.0 }
 0x10c   :  { %v928_v39 = vpack.c.bf16 %v832_v59, %v828_v23  ;;  %v694_v42 = vpop.f32.mrf.mxu1  ;;  %v502_v62 = vadd.f32 %v501_v48, %v179_v3  ;;  %v835_v31 = vmax.f32 %v500_v63, 0.0  ;;  %v923_v48 = vpack.c.bf16 %v823_v0, %v819_v22 }
 0x10d   :  { %v930_v27 = vpack.c.bf16 %v834_v32, %v830_v45  ;;  %v503_v21 = vpop.f32.mrf.mxu0  ;;  %v695_v46 = vadd.f32 %v694_v42, %v179_v3  ;;  %v837_v37 = vmax.f32 %v693_v54, 0.0  ;;  %v925_v16 = vpack.c.bf16 %v825_v30, %v821_v49  ;;  %v3771_v45 = vld [vmem:[#allocation5_spill] sm:$0xff] }
 0x10e   :  { %v504_v56 = vadd.f32 %v503_v21, %v184_v26  ;;  %v696_v12 = vpop.f32.mrf.mxu1  ;;  %1283 = vmatprep.subr.bf16.mxu0 %v928_v39  ;;  %v836_v17 = vmax.f32 %v502_v62, 0.0  ;;  %1052 = vperm.xlu1 %2346, %v3771_v45   ;;  %v3772_v32 = vmax.f32 %v2969_v58, 0.0  ;;  %v813_v30 = vmax.f32 %v2997_v2, 0.0 }
 0x10f   :  { %v697_v59 = vadd.f32 %v696_v12, %v184_v26  ;;  %1476 = vmatprep.subr.bf16.mxu1 %v930_v27  ;;  %v505_v50 = vpop.f32.mrf.mxu0  ;;  %1284 = vmatpush1.bf16.msra.mxu0 %v927_v10  ;;  %v838_v39 = vmax.f32 %v695_v46, 0.0  ;;  %v809_v58 = vmax.f32 %v2990_v44, 0.0  ;;  %v3776_v40 = vmax.f32 %v2958_v6, 0.0  ;;  %v3782_v46 = vld [vmem:[#allocation12_spill] sm:$0xff] }
 0x110   :  { %v839_v23 = vmax.f32 %v504_v56, 0.0  ;;  %v506_v47 = vadd.f32 %v505_v50, %v184_v26  ;;  %v698_v61 = vpop.f32.mrf.mxu1  ;;  %1477 = vmatpush1.bf16.msra.mxu1 %v929_v25  ;;  %1285 = vmatprep.subr.bf16.mxu0 %v924_v36  ;;  %v922_v0 = vpack.c.bf16 %v3773_v55, %v3772_v32  ;;  %v3777_v36 = vmax.f32 %v2972_v18, 0.0 }
 0x111   :  { %v841_v35 = vmax.f32 %v697_v59, 0.0  ;;  %v699_v24 = vadd.f32 %v698_v61, %v184_v26  ;;  %1478 = vmatprep.subr.bf16.mxu1 %v926_v60  ;;  %v509_v1 = vpop.f32.mrf.mxu0  ;;  %v3779_v56 = vmax.f32 %v2937_v5, 0.0  ;;  %v3780_v12 = vmax.f32 %v2949_v57, 0.0  ;;  %1854 = vperm.xlu0 %2348, %v3771_v45  }
 0x112   :  { %v3040_v3 = vpack.c.bf16 %v839_v23, %v835_v31  ;;  %v840_v10 = vmax.f32 %v506_v47, 0.0  ;;  %v702_v20 = vpop.f32.mrf.mxu1  ;;  %v510_v54 = vadd.f32 %v509_v1, %v2999_v34  ;;  %v919_v25 = vpack.c.bf16 %v3777_v36, %v3776_v40  ;;  %1060 = vperm.xlu1 %2346, %v3782_v46   ;;  %v3797_v40 = vld [vmem:[#allocation44_spill] sm:$0xff]  ;;  %v3798_v36 = vld [vmem:[#allocation38_spill] sm:$0xff] }
 0x113   :  { %v3047_v63 = vpack.c.bf16 %v841_v35, %v837_v37  ;;  %v842_v26 = vmax.f32 %v699_v24, 0.0  ;;  %v511_v42 = vpop.f32.mrf.mxu0  ;;  %1286 = vmatpush1.bf16.msra.mxu0 %v923_v48  ;;  %v703_v33 = vadd.f32 %v702_v20, %v2999_v34  ;;  %v3781_v44 = vmax.f32 %v2975_v41, 0.0  ;;  %v3791_v20 = vld [vmem:[#allocation11_spill] sm:$0xff] }
 0x114   :  { %3770 = vst [vmem:[#allocation48_spill] sm:$0xff] %v3040_v3  ;;  %v3051_v27 = vpack.c.bf16 %v840_v10, %v836_v17  ;;  %v704_v21 = vpop.f32.mrf.mxu1  ;;  %1479 = vmatpush1.bf16.msra.mxu1 %v925_v16  ;;  %1287 = vmatprep.subr.bf16.mxu0 %v3018_v11  ;;  %v916_v11 = vpack.c.bf16 %v3780_v12, %v3779_v56  ;;  %v3783_v59 = vmax.f32 %v2946_v28, 0.0  ;;  %v3784_v50 = vmax.f32 %v2955_v8, 0.0  ;;  %v3804_v12 = vld [vmem:[#allocation45_spill] sm:$0xff] }
 0x115   :  { %3774 = vst [vmem:[#allocation5_spill] sm:$0xff] %v3047_v63  ;;  %v3060_v62 = vpack.c.bf16 %v842_v26, %v838_v39  ;;  %1480 = vmatprep.subr.bf16.mxu1 %v922_v0  ;;  %v513_v2 = vpop.f32.mrf.mxu0  ;;  %v921_v22 = vpack.c.bf16 %v3781_v44, %v813_v30  ;;  %v512_v6 = vadd.f32 %v511_v42, %v2999_v34  ;;  %v3785_v41 = vmax.f32 %v2883_v43, 0.0  ;;  %v3795_v26 = vld [vmem:[#allocation21_spill] sm:$0xff]  ;;  %v3805_v44 = vld [vmem:[#allocation42_spill] sm:$0xff]  ;;  %v3846_v63 = vld [vmem:[#allocation28_spill] sm:$0xff] }
 0x116   :  { %3775 = vst [vmem:[#allocation49_spill] sm:$0xff] %v3051_v27  ;;  %v514_v18 = vadd.f32 %v513_v2, %v3015_v4  ;;  %v706_v60 = vpop.f32.mrf.mxu1  ;;  %v918_v15 = vpack.c.bf16 %v3784_v50, %v3783_v59  ;;  %v705_v5 = vadd.f32 %v704_v21, %v2999_v34  ;;  %v3786_v31 = vmax.f32 %v2918_v13, 0.0  ;;  %1068 = vperm.xlu1 %2346, %v3791_v20   ;;  %v3810_v50 = vld [vmem:[#allocation10_spill] sm:$0xff] }
 0x117   :  { %3778 = vst [vmem:[#allocation50_spill] sm:$0xff] %v3060_v62  ;;  %v707_v57 = vadd.f32 %v706_v60, %v3015_v4  ;;  %v515_v49 = vpop.f32.mrf.mxu0  ;;  %1288 = vmatpush1.bf16.msra.mxu0 %v919_v25  ;;  %v805_v47 = vmax.f32 %v2966_v51, 0.0  ;;  %v843_v61 = vmax.f32 %v510_v54, 0.0  ;;  %v3787_v34 = vmax.f32 %v2934_v38, 0.0  ;;  %v3800_v25 = vld [vmem:[#allocation39_spill] sm:$0xff]  ;;  %1862 = vperm.xlu0 %2348, %v3782_v46   ;;  %v3814_v46 = vld [vmem:[#allocation41_spill] sm:$0xff] }
 0x118   :  { %v912_v23 = vpack.c.bf16 %v3786_v31, %v3785_v41  ;;  %v847_v48 = vmax.f32 %v514_v18, 0.0  ;;  %v516_v28 = vadd.f32 %v515_v49, %v3015_v4  ;;  %v708_v37 = vpop.f32.mrf.mxu1  ;;  %1481 = vmatpush1.bf16.msra.mxu1 %v921_v22  ;;  %1289 = vmatprep.subr.bf16.mxu0 %v916_v11  ;;  %v845_v35 = vmax.f32 %v703_v33, 0.0  ;;  %v3808_v18 = vld [vmem:[#allocation35_spill] sm:$0xff]  ;;  %v3813_v49 = vld [vmem:[#allocation40_spill] sm:$0xff] }
 0x119   :  { %v915_v8 = vpack.c.bf16 %v807_v19, %v3787_v34  ;;  %v849_v24 = vmax.f32 %v707_v57, 0.0  ;;  %v709_v1 = vadd.f32 %v708_v37, %v3015_v4  ;;  %1482 = vmatprep.subr.bf16.mxu1 %v918_v15  ;;  %v3088_v43 = vpop.f32.mrf.mxu0  ;;  %v917_v13 = vpack.c.bf16 %v809_v58, %v805_v47  ;;  %v3811_v15 = vld [vmem:[#allocation15_spill] sm:$0xff]  ;;  %v3815_v47 = vld [vmem:[#allocation36_spill] sm:$0xff]  ;;  %v3818_v37 = vld [vmem:[#allocation14_spill] sm:$0xff] }
 0x11a   :  { %3788 = vst [vmem:[#allocation12_spill] sm:$0xff] %v3088_v43  ;;  %v844_v51 = vmax.f32 %v512_v6, 0.0  ;;  %v3091_v16 = vpack.c.bf16 %v847_v48, %v843_v61  ;;  %v848_v17 = vmax.f32 %v516_v28, 0.0  ;;  %v3093_v10 = vpop.f32.mrf.mxu1  ;;  %v846_v38 = vmax.f32 %v705_v5, 0.0  ;;  %1076 = vperm.xlu1 %2346, %v3810_v50   ;;  %v3812_v5 = vld [vmem:[#allocation17_spill] sm:$0xff] }
 0x11b   :  { %3790 = vst [vmem:[#allocation52_spill] sm:$0xff] %v3093_v10  ;;  %v3096_v32 = vpack.c.bf16 %v849_v24, %v845_v35  ;;  %v850_v55 = vmax.f32 %v709_v1, 0.0  ;;  %v3098_v0 = vpop.f32.mrf.mxu0  ;;  %1290 = vmatpush1.bf16.msra.mxu0 %v915_v8  ;;  %v3793_v4 = vmax.f32 %v2886_v9, 0.0  ;;  %v3794_v45 = vmax.f32 %v2926_v29, 0.0  ;;  %v3817_v28 = vld [vmem:[#allocation13_spill] sm:$0xff]  ;;  %v3819_v8 = vld [vmem:[#allocation32_spill] sm:$0xff]  ;;  %1870 = vperm.xlu0 %2348, %v3791_v20  }
 0x11c   :  { %3789 = vst [vmem:[#allocation51_spill] sm:$0xff] %v3091_v16  ;;  %v633_v42 = vadd.f32 %v3795_v26, %v2791_v7  ;;  %v788_v19 = vmax.f32 %v2898_v14, 0.0  ;;  %v797_v30 = vmax.f32 %v2923_v52, 0.0  ;;  %v3108_v54 = vpack.c.bf16 %v848_v17, %v844_v51  ;;  %v3110_v21 = vpop.f32.mrf.mxu1  ;;  %1483 = vmatpush1.bf16.msra.mxu1 %v917_v13  ;;  %1291 = vmatprep.subr.bf16.mxu0 %v912_v23  ;;  %v3803_v52 = vld [vmem:[#allocation34_spill] sm:$0xff]  ;;  %v3820_v13 = vld [vmem:[#allocation16_spill] sm:$0xff]  ;;  %v3821_v17 = vld [vmem:[#allocation33_spill] sm:$0xff] }
 0x11d   :  { %3792 = vst [vmem:[#allocation11_spill] sm:$0xff] %v3096_v32  ;;  %v914_v39 = vpack.c.bf16 %v3794_v45, %v3793_v4  ;;  %v790_v58 = vmax.f32 %v2909_v53, 0.0  ;;  %v791_v9 = vmax.f32 %v3797_v40, 0.0  ;;  %v3799_v29 = vmax.f32 %v3798_v36, 0.0  ;;  %v3120_v14 = vpop.f32.mrf.mxu0  ;;  %v3822_v45 = vld [vmem:[#allocation31_spill] sm:$0xff]  ;;  %v3847_v32 = vld [vmem:[#allocation25_spill] sm:$0xff] }
 0x11e   :  { %3796 = vst [vmem:[#allocation21_spill] sm:$0xff] %v3108_v54  ;;  %v3801_v33 = vmax.f32 %v3800_v25, 0.0  ;;  %v3118_v7 = vpack.c.bf16 %v850_v55, %v846_v38  ;;  %v784_v56 = vmax.f32 %v3803_v52, 0.0  ;;  %v793_v11 = vmax.f32 %v3804_v12, 0.0  ;;  %v3127_v6 = vpop.f32.mrf.mxu1  ;;  %v3824_v52 = vld [vmem:[#allocation8_spill] sm:$0xff]  ;;  %v3848_v16 = vld [vmem:[#allocation26_spill] sm:$0xff] }
 0x11f   :  { %1484 = vmatprep.subr.bf16.mxu1 %v914_v39  ;;  %v3806_v53 = vmax.f32 %v3805_v44, 0.0  ;;  %3807 = vst [vmem:[#allocation38_spill] sm:$0xff] %v3127_v6  ;;  %v3809_v60 = vmax.f32 %v3808_v18, 0.0  ;;  %v619_v57 = vadd.f32 %v3812_v5, %v3811_v15  ;;  %v786_v41 = vmax.f32 %v3813_v49, 0.0  ;;  %v3136_v23 = vpop.f32.mrf.mxu0  ;;  %1878 = vperm.xlu0 %2348, %v3810_v50   ;;  %v3825_v12 = vld [vmem:[#allocation20_spill] sm:$0xff]  ;;  %v3828_v50 = vld [vmem:[#allocation18_spill] sm:$0xff] }
 0x120   :  { %v911_v2 = vpack.c.bf16 %v3801_v33, %v3799_v29  ;;  %3802 = vst [vmem:[#allocation44_spill] sm:$0xff] %v3118_v7  ;;  %v787_v31 = vmax.f32 %v3814_v46, 0.0  ;;  %v3816_v61 = vmax.f32 %v3815_v47, 0.0  ;;  %v422_v34 = vadd.f32 %v3818_v37, %v3817_v28  ;;  %v3143_v1 = vpop.f32.mrf.mxu1  ;;  %v3829_v5 = vld [vmem:[#allocation19_spill] sm:$0xff] }
 0x121   :  { %v913_v22 = vpack.c.bf16 %v3806_v53, %v797_v30  ;;  %v908_v59 = vpack.c.bf16 %v3809_v60, %v788_v19  ;;  %v780_v35 = vmax.f32 %v3819_v8, 0.0  ;;  %v789_v24 = vmax.f32 %v633_v42, 0.0  ;;  %v3148_v4 = vpop.f32.mrf.mxu0  ;;  %v3823_v30 = vld [vmem:[#allocation9_spill] sm:$0xff]  ;;  %v3826_v53 = vld [vmem:[#allocation22_spill] sm:$0xff]  ;;  %v3849_v7 = vld [vmem:[#allocation23_spill] sm:$0xff] }
 0x122   :  { %1292 = vmatpush1.bf16.msra.mxu0 %v911_v2  ;;  %v910_v48 = vpack.c.bf16 %v3816_v61, %v790_v58  ;;  %v615_v51 = vadd.f32 %v3820_v13, %v3817_v28  ;;  %v782_v38 = vmax.f32 %v3821_v17, 0.0  ;;  %v907_v55 = vpack.c.bf16 %v791_v9, %v787_v31  ;;  %v3152_v19 = vpop.f32.mrf.mxu1  ;;  %1084 = vperm.xlu1 %2346, %v3823_v30   ;;  %v3827_v60 = vld [vmem:[#allocation6_spill] sm:$0xff]  ;;  %v2419_v31 = vld [vmem:[%s3686_s3] sm:$0xff]  ;;  %v2421_v17 = vld [vmem:[%s3686_s3 + $0x18] sm:$0xff] }
 0x123   :  { %1485 = vmatpush1.bf16.msra.mxu1 %v913_v22  ;;  %1293 = vmatprep.subr.bf16.mxu0 %v908_v59  ;;  %v776_v39 = vmax.f32 %v3822_v45, 0.0  ;;  %v909_v26 = vpack.c.bf16 %v793_v11, %v789_v24  ;;  %v904_v42 = vpack.c.bf16 %v784_v56, %v780_v35  ;;  %v778_v58 = vmax.f32 %v619_v57, 0.0  ;;  %v3155_v40 = vpop.f32.mrf.mxu0 }
 0x124   :  { %1486 = vmatprep.subr.bf16.mxu1 %v910_v48  ;;  %v906_v36 = vpack.c.bf16 %v786_v41, %v782_v38  ;;  %v772_v29 = vmax.f32 %v422_v34, 0.0  ;;  %v3157_v9 = vpop.f32.mrf.mxu1  ;;  %v774_v25 = vmax.f32 %v615_v51, 0.0  ;;  %1886 = vperm.xlu0 %2348, %v3823_v30   ;;  %v3830_v41 = vmov 2   ;;  %v3831_v48 = vld [vmem:[#allocation7_spill] sm:$0xff] }
 0x125   :  { %v3159_v20 = vpop.f32.mrf.mxu0  ;;  %v2420_v34 = vld [vmem:[%s3686_s3 + $0x10] sm:$0xff]  ;;  %v3832_v24 = vmov 1  }
 0x126   :  { %1294 = vmatpush1.bf16.msra.mxu0 %v907_v55  ;;  %v3162_v33 = vpop.f32.mrf.mxu1  ;;  %v900_v2 = vpack.c.bf16 %v776_v39, %v772_v29  ;;  %1092 = vperm.xlu1 %2346, %v3824_v52   ;;  %v902_v11 = vpack.c.bf16 %v778_v58, %v774_v25  ;;  %v2423_v29 = vld [vmem:[%s3686_s3 + $0x38] sm:$0xff] }
 0x127   :  { %1487 = vmatpush1.bf16.msra.mxu1 %v909_v26  ;;  %1295 = vmatprep.subr.bf16.mxu0 %v904_v42  ;;  %v535_v56 = vpop.f32.mrf.mxu0  ;;  %v2422_v26 = vld [vmem:[%s3686_s3 + $0x28] sm:$0xff] }
 0x128   :  { %1488 = vmatprep.subr.bf16.mxu1 %v906_v36  ;;  %v728_v44 = vpop.f32.mrf.mxu1  ;;  %1894 = vperm.xlu0 %2348, %v3824_v52  }
 0x129   :  { %v3167_v22 = vpop.f32.mrf.mxu0 }
 0x12a   :  { %1296 = vmatpush1.bf16.msra.mxu0 %v3825_v12  ;;  %v3170_v18 = vpop.f32.mrf.mxu1  ;;  %1100 = vperm.xlu1 %2346, %v3827_v60  }
 0x12b   :  { %1489 = vmatpush1.bf16.msra.mxu1 %v3826_v53  ;;  %1297 = vmatprep.subr.bf16.mxu0 %v900_v2  ;;  %v541_v59 = vpop.f32.mrf.mxu0  ;;  %v3833_v2 = vld [vmem:[#allocation46_spill] sm:$0xff]  ;;  %v3836_v53 = vld [vmem:[#allocation47_spill] sm:$0xff] }
 0x12c   :  { %1490 = vmatprep.subr.bf16.mxu1 %v902_v11  ;;  %v734_v15 = vpop.f32.mrf.mxu1  ;;  %1906 = vperm.xlu0 %2348, %v3831_v48   ;;  %v3206_v52 = vadd.f32 %v3098_v0, %v3833_v2  ;;  %v3210_v12 = vadd.f32 %v3110_v21, %v3833_v2  ;;  %v3214_v60 = vadd.f32 %v3136_v23, %v3836_v53  ;;  %v3842_v21 = vld [vmem:[#allocation43_spill] sm:$0xff] }
 0x12d   :  { %v3175_v57 = vpop.f32.mrf.mxu0  ;;  %v3232_v23 = vadd.f32 %v728_v44, %v3842_v21  ;;  %v3845_v44 = vld [vmem:[#allocation27_spill] sm:$0xff] }
 0x12e   :  { %1298 = vmatpush1.bf16.msra.mxu0 %v3828_v50  ;;  %v3178_v49 = vpop.f32.mrf.mxu1  ;;  %2347 = vset.pattern.permute.xlu1 %v3830_v41  ;;  %3834 = vst [vmem:[#allocation39_spill] sm:$0xff] %v3206_v52  ;;  %3835 = vst [vmem:[#allocation34_spill] sm:$0xff] %v3210_v12  ;;  %v3218_v50 = vadd.f32 %v3143_v1, %v3836_v53  ;;  %v3844_v41 = vld [vmem:[#allocation30_spill] sm:$0xff]  ;;  %v3850_v12 = vld [vmem:[#allocation24_spill] sm:$0xff] }
 0x12f   :  { %1491 = vmatpush1.bf16.msra.mxu1 %v3829_v5  ;;  %v545_v46 = vpop.f32.mrf.mxu0  ;;  %1798 = vperm.xlu1 %2347, %v2419_v31   ;;  %3837 = vst [vmem:[#allocation45_spill] sm:$0xff] %v3214_v60  ;;  %v3839_v5 = vld [vmem:[#allocation37_spill] sm:$0xff] }
 0x130   :  { %v738_v47 = vpop.f32.mrf.mxu1  ;;  %2350 = vset.pattern.permute.xlu0 %v3832_v24  ;;  %3838 = vst [vmem:[#allocation42_spill] sm:$0xff] %v3218_v50  ;;  %v3226_v0 = vadd.f32 %v3157_v9, %v3839_v5  ;;  %v2424_v9 = vld [vmem:[%s3686_s3 + $0x48] sm:$0xff] }
 0x131   :  { %v3184_v61 = vpop.f32.mrf.mxu0  ;;  %996 = vperm.xlu0 %2350, %v2419_v31   ;;  %v3222_v31 = vadd.f32 %v3155_v40, %v3839_v5 }
 0x132   :  { %v3187_v28 = vpop.f32.mrf.mxu1  ;;  %3841 = vst [vmem:[#allocation10_spill] sm:$0xff] %v3226_v0 }
 0x133   :  { %v551_v37 = vpop.f32.mrf.mxu0  ;;  %1806 = vperm.xlu1 %2347, %v2420_v34   ;;  %3840 = vst [vmem:[#allocation35_spill] sm:$0xff] %v3222_v31  ;;  %v3229_v34 = vadd.f32 %v535_v56, %v3842_v21  ;;  %v3247_v56 = vadd.f32 %v738_v47, %v3844_v41 }
 0x134   :  { %v744_v8 = vpop.f32.mrf.mxu1  ;;  %v3250_v24 = vadd.f32 %v551_v37, %v3845_v44 }
 0x135   :  { %v553_v35 = vpop.f32.mrf.mxu0  ;;  %1008 = vperm.xlu0 %2350, %v2421_v17  }
 0x136   :  { %v746_v13 = vpop.f32.mrf.mxu1  ;;  %v3256_v3 = vadd.f32 %v553_v35, %v3846_v63 }
 0x137   :  { %v555_v51 = vpop.f32.mrf.mxu0  ;;  %1810 = vperm.xlu1 %2347, %v2421_v17   ;;  %v3843_v17 = vld [vmem:[#allocation29_spill] sm:$0xff]  ;;  %v3259_v62 = vadd.f32 %v746_v13, %v3846_v63 }
 0x138   :  { %v748_v38 = vpop.f32.mrf.mxu1  ;;  %v3238_v1 = vadd.f32 %v734_v15, %v3843_v17  ;;  %v3262_v27 = vadd.f32 %v555_v51, %v3846_v63 }
 0x139   :  { %v559_v55 = vpop.f32.mrf.mxu0  ;;  %1016 = vperm.xlu0 %2350, %v2422_v26  }
 0x13a   :  { %v3196_v45 = vpop.f32.mrf.mxu1  ;;  %v3268_v37 = vadd.f32 %v559_v55, %v3847_v32  ;;  %v2425_v55 = vld [vmem:[%s3686_s3 + $0x58] sm:$0xff] }
 0x13b   :  { %v561_v39 = vpop.f32.mrf.mxu0  ;;  %1818 = vperm.xlu1 %2347, %v2422_v26   ;;  %v3235_v26 = vadd.f32 %v541_v59, %v3843_v17  ;;  %v3253_v59 = vadd.f32 %v744_v8, %v3845_v44 }
 0x13c   :  { %v754_v42 = vpop.f32.mrf.mxu1 }
 0x13d   :  { %v563_v30 = vpop.f32.mrf.mxu0  ;;  %1024 = vperm.xlu0 %2350, %v2423_v29  }
 0x13e   :  { %v756_v58 = vpop.f32.mrf.mxu1 }
 0x13f   :  { %v565_v36 = vpop.f32.mrf.mxu0  ;;  %1826 = vperm.xlu1 %2347, %v2423_v29   ;;  %v3244_v29 = vadd.f32 %v545_v46, %v3844_v41  ;;  %v3265_v46 = vadd.f32 %v748_v38, %v3846_v63 }
 0x140   :  { %v758_v25 = vpop.f32.mrf.mxu1  ;;  %v566_v8 = vadd.f32 %v565_v36, %v3848_v16  ;;  %v562_v36 = vadd.f32 %v561_v39, %v3847_v32 }
 0x141   :  { %v569_v11 = vpop.f32.mrf.mxu0  ;;  %1032 = vperm.xlu0 %2350, %v2424_v9   ;;  %v759_v13 = vadd.f32 %v758_v25, %v3848_v16 }
 0x142   :  { %v762_v48 = vpop.f32.mrf.mxu1  ;;  %v570_v51 = vadd.f32 %v569_v11, %v3849_v7  ;;  %v564_v11 = vadd.f32 %v563_v30, %v3848_v16  ;;  %v888_v43 = vmax.f32 %v566_v8, 0.0  ;;  %v884_v30 = vmax.f32 %v562_v36, 0.0 }
 0x143   :  { %v571_v40 = vpop.f32.mrf.mxu0  ;;  %1834 = vperm.xlu1 %2347, %v2424_v9   ;;  %v763_v9 = vadd.f32 %v762_v48, %v3849_v7  ;;  %v890_v39 = vmax.f32 %v759_v13, 0.0  ;;  %v880_v13 = vmax.f32 %v3262_v27, 0.0  ;;  %v743_v27 = vadd.f32 %v3187_v28, %v3845_v44 }
 0x144   :  { %v764_v15 = vpop.f32.mrf.mxu1  ;;  %v572_v54 = vadd.f32 %v571_v40, %v3849_v7  ;;  %v755_v40 = vadd.f32 %v754_v42, %v3847_v32  ;;  %v891_v6 = vmax.f32 %v570_v51, 0.0  ;;  %v872_v28 = vmax.f32 %v3244_v29, 0.0 }
 0x145   :  { %v573_v47 = vpop.f32.mrf.mxu0  ;;  %v765_v10 = vadd.f32 %v764_v15, %v3849_v7  ;;  %v757_v15 = vadd.f32 %v756_v58, %v3848_v16  ;;  %1040 = vperm.xlu0 %2350, %v2425_v55   ;;  %v2426_v7 = vld [vmem:[%s3686_s3 + $0x68] sm:$0xff]  ;;  %v753_v16 = vadd.f32 %v3196_v45, %v3847_v32  ;;  %v893_v58 = vmax.f32 %v763_v9, 0.0 }
 0x146   :  { %v574_v35 = vadd.f32 %v573_v47, %v3850_v12  ;;  %v766_v52 = vpop.f32.mrf.mxu1  ;;  %v892_v2 = vmax.f32 %v572_v54, 0.0  ;;  %v886_v48 = vmax.f32 %v755_v40, 0.0  ;;  %v887_v54 = vmax.f32 %v564_v11, 0.0 }
 0x147   :  { %v767_v63 = vadd.f32 %v766_v52, %v3850_v12  ;;  %v575_v38 = vpop.f32.mrf.mxu0  ;;  %1842 = vperm.xlu1 %2347, %v2425_v55   ;;  %v894_v42 = vmax.f32 %v765_v10, 0.0  ;;  %v889_v51 = vmax.f32 %v757_v15, 0.0  ;;  %v956_v10 = vpack.c.bf16 %v888_v43, %v884_v30  ;;  %v3851_v15 = vld [vmem:[#allocation35_spill] sm:$0xff]  ;;  %v3854_v30 = vld [vmem:[#allocation45_spill] sm:$0xff] }
 0x148   :  { %v576_v25 = vadd.f32 %v575_v38, %v3850_v12  ;;  %v768_v47 = vpop.f32.mrf.mxu1  ;;  %v895_v52 = vmax.f32 %v574_v35, 0.0  ;;  %v882_v38 = vmax.f32 %v3265_v46, 0.0  ;;  %v883_v32 = vmax.f32 %v3268_v37, 0.0 }
 0x149   :  { %v769_v50 = vadd.f32 %v768_v47, %v3850_v12  ;;  %v897_v60 = vmax.f32 %v767_v63, 0.0  ;;  %1048 = vperm.xlu0 %2350, %v2426_v7   ;;  %v550_v63 = vadd.f32 %v3184_v61, %v3845_v44  ;;  %v958_v45 = vpack.c.bf16 %v890_v39, %v886_v48  ;;  %v3852_v39 = vld [vmem:[#allocation38_spill] sm:$0xff] }
 0x14a   :  { %v896_v0 = vmax.f32 %v576_v25, 0.0  ;;  %v959_v8 = vpack.c.bf16 %v895_v52, %v891_v6  ;;  %v544_v6 = vadd.f32 %v3175_v57, %v3844_v41  ;;  %v876_v43 = vmax.f32 %v3250_v24, 0.0  ;;  %v2427_v57 = vld [vmem:[%s3686_s3 + $0x78] sm:$0xff]  ;;  %v3855_v48 = vld [vmem:[#allocation46_spill] sm:$0xff] }
 0x14b   :  { %v898_v31 = vmax.f32 %v769_v50, 0.0  ;;  %1850 = vperm.xlu1 %2347, %v2426_v7   ;;  %v961_v50 = vpack.c.bf16 %v897_v60, %v893_v58  ;;  %v737_v61 = vadd.f32 %v3178_v49, %v3844_v41  ;;  %v878_v60 = vmax.f32 %v3253_v59, 0.0 }
 0x14c   :  { %v960_v12 = vpack.c.bf16 %v896_v0, %v892_v2  ;;  %v885_v2 = vmax.f32 %v753_v16, 0.0  ;;  %v955_v0 = vpack.c.bf16 %v887_v54, %v883_v32  ;;  %v881_v24 = vmax.f32 %v3259_v62, 0.0  ;;  %v3856_v54 = vld [vmem:[#allocation12_spill] sm:$0xff] }
 0x14d   :  { %v962_v35 = vpack.c.bf16 %v898_v31, %v894_v42  ;;  %v879_v31 = vmax.f32 %v3256_v3, 0.0  ;;  %v952_v44 = vpack.c.bf16 %v880_v13, %v876_v43  ;;  %1056 = vperm.xlu0 %2350, %v2427_v57   ;;  %v540_v49 = vadd.f32 %v3167_v22, %v3843_v17 }
 0x14e   :  { %1299 = vmatprep.subr.bf16.mxu0 %v960_v12  ;;  %v957_v46 = vpack.c.bf16 %v889_v51, %v885_v2  ;;  %v874_v41 = vmax.f32 %v3247_v56, 0.0  ;;  %v875_v3 = vmax.f32 %v550_v63, 0.0  ;;  %v954_v59 = vpack.c.bf16 %v882_v38, %v878_v60  ;;  %v3859_v63 = vld [vmem:[#allocation39_spill] sm:$0xff]  ;;  %v2430_v2 = vld [vmem:[%s3686_s3 + $0xa8] sm:$0xff] }
 0x14f   :  { %1492 = vmatprep.subr.bf16.mxu1 %v962_v35  ;;  %1300 = vmatpush2.bf16.msra.mxu0 %v959_v8  ;;  %v534_v37 = vadd.f32 %v3159_v20, %v3842_v21  ;;  %v733_v55 = vadd.f32 %v3170_v18, %v3843_v17  ;;  %v868_v29 = vmax.f32 %v3235_v26, 0.0  ;;  %v877_v62 = vmax.f32 %v743_v27, 0.0  ;;  %v2428_v20 = vld [vmem:[%s3686_s3 + $0x88] sm:$0xff] }
 0x150   :  { %1493 = vmatpush2.bf16.msra.mxu1 %v961_v50  ;;  %1301 = vmatprep.subr.bf16.mxu0 %v956_v10  ;;  %v727_v36 = vadd.f32 %v3162_v33, %v3842_v21  ;;  %v870_v22 = vmax.f32 %v3238_v1, 0.0  ;;  %v871_v56 = vmax.f32 %v544_v6, 0.0  ;;  %v951_v40 = vpack.c.bf16 %v879_v31, %v875_v3  ;;  %v3858_v10 = vld [vmem:[#allocation52_spill] sm:$0xff]  ;;  %v2432_v3 = vld [vmem:[%s3686_s3 + $0xc8] sm:$0xff] }
 0x151   :  { %1494 = vmatprep.subr.bf16.mxu1 %v958_v45  ;;  %1858 = vperm.xlu1 %2347, %v2427_v57   ;;  %v864_v18 = vmax.f32 %v3229_v34, 0.0  ;;  %v873_v17 = vmax.f32 %v737_v61, 0.0  ;;  %v948_v26 = vpack.c.bf16 %v872_v28, %v868_v29  ;;  %v953_v9 = vpack.c.bf16 %v881_v24, %v877_v62  ;;  %v3860_v45 = vld [vmem:[#allocation34_spill] sm:$0xff] }
 0x152   :  { %1064 = vperm.xlu0 %2350, %v2428_v20   ;;  %v530_v25 = vadd.f32 %v3148_v4, %v3839_v5  ;;  %v866_v33 = vmax.f32 %v3232_v23, 0.0  ;;  %v867_v21 = vmax.f32 %v540_v49, 0.0  ;;  %v950_v1 = vpack.c.bf16 %v874_v41, %v870_v22  ;;  %v3853_v4 = vld [vmem:[#allocation10_spill] sm:$0xff]  ;;  %v3861_v49 = vld [vmem:[#allocation21_spill] sm:$0xff]  ;;  %v3862_v41 = vld [vmem:[#allocation44_spill] sm:$0xff] }
 0x153   :  { %1302 = vmatpush2.bf16.msra.mxu0 %v955_v0  ;;  %v524_v47 = vadd.f32 %v3120_v14, %v3836_v53  ;;  %v723_v11 = vadd.f32 %v3152_v19, %v3839_v5  ;;  %v860_v34 = vmax.f32 %v3851_v15, 0.0  ;;  %v869_v52 = vmax.f32 %v733_v55, 0.0  ;;  %v2429_v14 = vld [vmem:[%s3686_s3 + $0x98] sm:$0xff]  ;;  %v3865_v55 = vld [vmem:[#allocation49_spill] sm:$0xff]  ;;  %v3866_v29 = vld [vmem:[#allocation50_spill] sm:$0xff] }
 0x154   :  { %1495 = vmatpush2.bf16.msra.mxu1 %v957_v46  ;;  %1303 = vmatprep.subr.bf16.mxu0 %v952_v44  ;;  %v717_v42 = vadd.f32 %v3852_v39, %v3836_v53  ;;  %v862_v7 = vmax.f32 %v3853_v4, 0.0  ;;  %v863_v23 = vmax.f32 %v534_v37, 0.0  ;;  %v947_v16 = vpack.c.bf16 %v871_v56, %v867_v21  ;;  %v3857_v53 = vld [vmem:[#allocation42_spill] sm:$0xff]  ;;  %v2431_v44 = vld [vmem:[%s3686_s3 + $0xb8] sm:$0xff] }
 0x155   :  { %1496 = vmatprep.subr.bf16.mxu1 %v954_v59  ;;  %1866 = vperm.xlu1 %2347, %v2428_v20   ;;  %v856_v19 = vmax.f32 %v3854_v30, 0.0  ;;  %v865_v5 = vmax.f32 %v727_v36, 0.0  ;;  %v944_v58 = vpack.c.bf16 %v864_v18, %v860_v34  ;;  %v949_v12 = vpack.c.bf16 %v873_v17, %v869_v52  ;;  %v3863_v59 = vld [vmem:[#allocation51_spill] sm:$0xff]  ;;  %v2371_v36 = vld [vmem:[%s3685_s2] ss:$8 sps:$4 sm:$0xff]  }
 0x156   :  { %1072 = vperm.xlu0 %2350, %v2429_v14   ;;  %v520_v8 = vadd.f32 %v3856_v54, %v3855_v48  ;;  %v858_v35 = vmax.f32 %v3857_v53, 0.0  ;;  %v859_v13 = vmax.f32 %v530_v25, 0.0  ;;  %v946_v51 = vpack.c.bf16 %v866_v33, %v862_v7  ;;  %v3864_v37 = vld [vmem:[#allocation11_spill] sm:$0xff]  ;;  %v3867_v56 = vld [vmem:[#allocation48_spill] sm:$0xff]  ;;  %v3868_v20 = vld [vmem:[#allocation5_spill] sm:$0xff] }
 0x157   :  { %1304 = vmatpush2.bf16.msra.mxu0 %v951_v40  ;;  %v713_v50 = vadd.f32 %v3858_v10, %v3855_v48  ;;  %v852_v38 = vmax.f32 %v3859_v63, 0.0  ;;  %v861_v32 = vmax.f32 %v723_v11, 0.0  ;;  %v854_v6 = vmax.f32 %v3860_v45, 0.0  ;;  %v2433_v62 = vld [vmem:[%s3686_s3 + $0xd0] sm:$0xff]  ;;  %v2434_v22 = vld [vmem:[%s3686_s3 + $0xd8] sm:$0xff]  ;;  %v2435_v17 = vld [vmem:[%s3686_s3 + $0xe0] sm:$0xff] }
 0x158   :  { %1497 = vmatpush2.bf16.msra.mxu1 %v953_v9  ;;  %1305 = vmatprep.subr.bf16.mxu0 %v948_v26  ;;  %v855_v27 = vmax.f32 %v524_v47, 0.0  ;;  %v943_v43 = vpack.c.bf16 %v863_v23, %v859_v13  ;;  %v857_v61 = vmax.f32 %v717_v42, 0.0  ;;  %v851_v0 = vmax.f32 %v520_v8, 0.0  ;;  %v2374_v40 = vld [vmem:[%s3685_s2 + $0x14] ss:$8 sps:$4 sm:$0xff]   ;;  %v2436_v26 = vld [vmem:[%s3686_s3 + $0xe8] sm:$0xff] }
 0x159   :  { %1498 = vmatprep.subr.bf16.mxu1 %v950_v1  ;;  %1874 = vperm.xlu1 %2347, %v2429_v14   ;;  %v940_v60 = vpack.c.bf16 %v856_v19, %v852_v38  ;;  %v945_v31 = vpack.c.bf16 %v865_v5, %v861_v32  ;;  %v942_v57 = vpack.c.bf16 %v858_v35, %v854_v6  ;;  %v853_v28 = vmax.f32 %v713_v50, 0.0  ;;  %v2376_v9 = vld [vmem:[%s3685_s2 + $0x10] ss:$8 sps:$4 sm:$0xff]   ;;  %v2377_v33 = vld [vmem:[%s3685_s2 + $0x24] ss:$8 sps:$4 sm:$0xff]   ;;  %v1001_v32 = vpop.permute.xlu1 %1000 }
 0x15a   :  { %1080 = vperm.xlu0 %2350, %v2430_v2   ;;  %v939_v24 = vpack.c.bf16 %v855_v27, %v851_v0  ;;  %v3869_v18 = vmov 1   ;;  %v2437_v25 = vld [vmem:[%s3686_s3 + $0xf8] sm:$0xff]  ;;  %v2438_v21 = vld [vmem:[%s3686_s3 + $0xf0] sm:$0xff]  ;;  %v3870_v1 = vmov 2   ;;  %v2379_v47 = vld [vmem:[%s3685_s2 + $0x20] ss:$8 sps:$4 sm:$0xff]  }
 0x15b   :  { %1306 = vmatpush2.bf16.msra.mxu0 %v947_v16  ;;  %v941_v46 = vpack.c.bf16 %v857_v61, %v853_v28  ;;  %v2380_v11 = vld [vmem:[%s3685_s2 + $0x34] ss:$8 sps:$4 sm:$0xff]   ;;  %v2382_v15 = vld [vmem:[%s3685_s2 + $0x30] ss:$8 sps:$4 sm:$0xff]   ;;  %v2383_v34 = vld [vmem:[%s3685_s2 + $0x44] ss:$8 sps:$4 sm:$0xff]  }
 0x15c   :  { %1499 = vmatpush2.bf16.msra.mxu1 %v949_v12  ;;  %1307 = vmatprep.subr.bf16.mxu0 %v944_v58  ;;  %v2385_v52 = vld [vmem:[%s3685_s2 + $0x40] ss:$8 sps:$4 sm:$0xff]   ;;  %v2386_v39 = vld [vmem:[%s3685_s2 + $0x54] ss:$8 sps:$4 sm:$0xff]   ;;  %v2388_v42 = vld [vmem:[%s3685_s2 + $0x50] ss:$8 sps:$4 sm:$0xff]  }
 0x15d   :  { %1500 = vmatprep.subr.bf16.mxu1 %v946_v51  ;;  %1882 = vperm.xlu1 %2347, %v2430_v2   ;;  %v2389_v4 = vld [vmem:[%s3685_s2 + $0x64] ss:$8 sps:$4 sm:$0xff]   ;;  %v2391_v7 = vld [vmem:[%s3685_s2 + $0x60] ss:$8 sps:$4 sm:$0xff]   ;;  %v2392_v23 = vld [vmem:[%s3685_s2 + $0x74] ss:$8 sps:$4 sm:$0xff]   ;;  %v3479_v45 = vpop.permute.xlu0 %1802  ;;  %v3484_v27 = vpop.permute.xlu1 %1004 }
 0x15e   :  { %1088 = vperm.xlu0 %2350, %v2431_v44   ;;  %v2394_v16 = vld [vmem:[%s3685_s2 + $0x70] ss:$8 sps:$4 sm:$0xff]   ;;  %v2395_v14 = vld [vmem:[%s3685_s2 + $0x84] ss:$8 sps:$4 sm:$0xff]   ;;  %v2397_v30 = vld [vmem:[%s3685_s2 + $0x80] ss:$8 sps:$4 sm:$0xff]  }
 0x15f   :  { %1308 = vmatpush2.bf16.msra.mxu0 %v943_v43  ;;  %v2398_v19 = vld [vmem:[%s3685_s2 + $0x94] ss:$8 sps:$4 sm:$0xff]   ;;  %v2400_v5 = vld [vmem:[%s3685_s2 + $0x90] ss:$8 sps:$4 sm:$0xff]   ;;  %v2401_v58 = vld [vmem:[%s3685_s2 + $0xa4] ss:$8 sps:$4 sm:$0xff]  }
 0x160   :  { %1501 = vmatpush2.bf16.msra.mxu1 %v945_v31  ;;  %1309 = vmatprep.subr.bf16.mxu0 %v940_v60  ;;  %v2403_v12 = vld [vmem:[%s3685_s2 + $0xa0] ss:$8 sps:$4 sm:$0xff]   ;;  %v2404_v48 = vld [vmem:[%s3685_s2 + $0xb4] ss:$8 sps:$4 sm:$0xff]   ;;  %v2406_v54 = vld [vmem:[%s3685_s2 + $0xb0] ss:$8 sps:$4 sm:$0xff]  }
 0x161   :  { %1502 = vmatprep.subr.bf16.mxu1 %v942_v57  ;;  %1890 = vperm.xlu1 %2347, %v2431_v44   ;;  %v2409_v8 = vld [vmem:[%s3685_s2 + $0xc4] ss:$8 sps:$4 sm:$0xff]   ;;  %v2464_v53 = vmov 3   ;;  %v51_v35 = vld [vmem:[%s3686_s3] sm:$0x1]  ;;  %v3486_v43 = vpop.permute.xlu0 %1814  ;;  %v3488_v2 = vpop.permute.xlu1 %1012 }
 0x162   :  { %1096 = vperm.xlu0 %2350, %v2432_v3   ;;  %v2407_v13 = vld [vmem:[%s3685_s2 + $0xc0] ss:$8 sps:$4 sm:$0xff]   ;;  %v2412_v51 = vld [vmem:[%s3685_s2 + $0xd4] ss:$8 sps:$4 sm:$0xff]   ;;  %v2410_v10 = vld [vmem:[%s3685_s2 + $0xd0] ss:$8 sps:$4 sm:$0xff]  }
 0x163   :  { %1310 = vmatpush2.bf16.msra.mxu0 %v939_v24  ;;  %v2415_v50 = vld [vmem:[%s3685_s2 + $0xe4] ss:$8 sps:$4 sm:$0xff]   ;;  %v2413_v63 = vld [vmem:[%s3685_s2 + $0xe0] ss:$8 sps:$4 sm:$0xff]   ;;  %v2418_v38 = vld [vmem:[%s3685_s2 + $0xf4] ss:$8 sps:$4 sm:$0xff]  }
 0x164   :  { %1503 = vmatpush2.bf16.msra.mxu1 %v941_v46  ;;  %1311 = vmatprep.subr.bf16.mxu0 %v3861_v49  ;;  %v2416_v6 = vld [vmem:[%s3685_s2 + $0xf0] ss:$8 sps:$4 sm:$0xff]   ;;  %s2466_s2 = smov [#allocation2]  }
 0x165   :  { %1504 = vmatprep.subr.bf16.mxu1 %v3862_v41  ;;  %1898 = vperm.xlu1 %2347, %v2432_v3   ;;  %v3490_v61 = vpop.permute.xlu0 %1822  ;;  %v3492_v60 = vpop.permute.xlu1 %1020  ;;  %s2250_s12 = sshll.u32 %s2466_s2, 4  ;;  %s2251_s12 = int_to_ptr.vmem [resolvable:$true] %s2250_s12 }
 0x166   :  { %1104 = vperm.xlu0 %2350, %v2434_v22   ;;  %s2439_s13 = scalar_lea.vmem %s2251_s12, 64  ;;  %p2444_p1 = scmp.lt.s32.totalorder %s2251_s12, %s2251_s12 }
 0x167   :  { %1312 = vmatpush2.bf16.msra.mxu0 %v3863_v59  ;;  %p2440_p0 = scmp.ne.s32.totalorder %s2251_s12, %s2439_s13  ;;  %p2445_p2 = scmp.lt.s32.totalorder %s2439_s13, %s2439_s13 }
 0x168   :  { %1505 = vmatpush2.bf16.msra.mxu1 %v3864_v37  ;;  %1313 = vmatprep.subr.bf16.mxu0 %v3865_v55 }
 0x169   :  { %1506 = vmatprep.subr.bf16.mxu1 %v3866_v29  ;;  %1902 = vperm.xlu1 %2347, %v2433_v62   ;;  %v3494_v31 = vpop.permute.xlu0 %1830  ;;  %v3496_v0 = vpop.permute.xlu1 %1028  ;;  %p2446_p3 = por %p2445_p2, %p2444_p1 }
 0x16a   :  { %1108 = vperm.xlu0 %2350, %v2435_v17  }
 0x16b   :  { %1314 = vmatpush2.bf16.msra.mxu0 %v3867_v56  ;;  %p2447_p4 = pnand %p2446_p3, %p2440_p0 }
 0x16c   :  { %1507 = vmatpush2.bf16.msra.mxu1 %v3868_v20 }
 0x16d   :  { %2349 = vset.pattern.permute.xlu1 %v3869_v18  ;;  %v3498_v57 = vpop.permute.xlu0 %1838  ;;  %v3500_v28 = vpop.permute.xlu1 %1036 }
 0x16e   :  { %1316 = vmatmul.mubr.bf16.vlgmr.msra.gmra.mxu0 %v2371_v36  ;;  %1112 = vperm.xlu1 %2349, %v2436_v26  }
 0x16f   :  { %1509 = vmatmul.mubr.bf16.vlgmr.msra.gmra.mxu1 %v2371_v36  ;;  %1325 = vmatprep.mubr.bf16.mxu0 %v2374_v40 }
 0x170   :  { %1518 = vmatprep.mubr.bf16.mxu1 %v2374_v40  ;;  %1120 = vperm.xlu0 %2350, %v2437_v25  }
 0x171   :  { %v3502_v24 = vpop.permute.xlu0 %1846  ;;  %v3504_v44 = vpop.permute.xlu1 %1044 }
 0x172   :  { %1116 = vperm.xlu1 %2349, %v2438_v21  }
 0x174   :  { %2352 = vset.pattern.permute.xlu0 %v3870_v1 }
 0x175   :  { %1922 = vperm.xlu0 %2352, %v2437_v25  }
 0x176   :  { %1326 = vmatmul.mubr.bf16.gmra.mxu0 %v2376_v9  ;;  %2351 = vset.pattern.permute.xlu1 %v3870_v1 }
 0x177   :  { %1519 = vmatmul.mubr.bf16.gmra.mxu1 %v2376_v9  ;;  %1335 = vmatprep.mubr.bf16.mxu0 %v2377_v33 }
 0x178   :  { %1528 = vmatprep.mubr.bf16.mxu1 %v2377_v33  ;;  %1910 = vperm.xlu1 %2351, %v2435_v17  }
 0x179   :  { %2354 = vset.pattern.permute.xlu0 %v2464_v53 }
 0x17c   :  { %1914 = vperm.xlu1 %2351, %v2436_v26  }
 0x17e   :  { %1336 = vmatmul.mubr.bf16.gmra.mxu0 %v2379_v47 }
 0x17f   :  { %1529 = vmatmul.mubr.bf16.gmra.mxu1 %v2379_v47  ;;  %1345 = vmatprep.mubr.bf16.mxu0 %v2380_v11 }
 0x180   :  { %1538 = vmatprep.mubr.bf16.mxu1 %v2380_v11  ;;  %1918 = vperm.xlu1 %2351, %v2438_v21  }
 0x184   :  { %2353 = vset.pattern.permute.xlu1 %v2464_v53 }
 0x185   :  { %2203 = vperm.xlu1 %2353, %v51_v35  }
 0x186   :  { %1346 = vmatmul.mubr.bf16.gmra.mxu0 %v2382_v15 }
 0x187   :  { %1539 = vmatmul.mubr.bf16.gmra.mxu1 %v2382_v15  ;;  %1355 = vmatprep.mubr.bf16.mxu0 %v2383_v34 }
 0x188   :  { %1548 = vmatprep.mubr.bf16.mxu1 %v2383_v34 }
 0x189   :  { %v3508_v49 = vpop.permute.xlu1 %1052 }
 0x18c   :  { %v3506_v46 = vpop.permute.xlu0 %1854 }
 0x18d   :  { %v3512_v3 = vpop.permute.xlu1 %1060 }
 0x18e   :  { %1356 = vmatmul.mubr.bf16.gmra.mxu0 %v2385_v52 }
 0x18f   :  { %1549 = vmatmul.mubr.bf16.gmra.mxu1 %v2385_v52  ;;  %1365 = vmatprep.mubr.bf16.mxu0 %v2386_v39 }
 0x190   :  { %1558 = vmatprep.mubr.bf16.mxu1 %v2386_v39 }
 0x191   :  { %v3516_v37 = vpop.permute.xlu1 %1068 }
 0x192   :  { %v3510_v41 = vpop.permute.xlu0 %1862 }
 0x195   :  { %v3520_v29 = vpop.permute.xlu1 %1076 }
 0x196   :  { %1366 = vmatmul.mubr.bf16.gmra.mxu0 %v2388_v42  ;;  %v3514_v59 = vpop.permute.xlu0 %1870 }
 0x197   :  { %1559 = vmatmul.mubr.bf16.gmra.mxu1 %v2388_v42  ;;  %1375 = vmatprep.mubr.bf16.mxu0 %v2389_v4 }
 0x198   :  { %1568 = vmatprep.mubr.bf16.mxu1 %v2389_v4 }
 0x19a   :  { %v3518_v55 = vpop.permute.xlu0 %1878 }
 0x19d   :  { %v3524_v36 = vpop.permute.xlu1 %1084 }
 0x19e   :  { %1376 = vmatmul.mubr.bf16.gmra.mxu0 %v2391_v7 }
 0x19f   :  { %1569 = vmatmul.mubr.bf16.gmra.mxu1 %v2391_v7  ;;  %1385 = vmatprep.mubr.bf16.mxu0 %v2392_v23  ;;  %v3522_v62 = vpop.permute.xlu0 %1886 }
 0x1a0   :  { %1578 = vmatprep.mubr.bf16.mxu1 %v2392_v23 }
 0x1a1   :  { %v3528_v56 = vpop.permute.xlu1 %1092 }
 0x1a3   :  { %v3526_v22 = vpop.permute.xlu0 %1894 }
 0x1a5   :  { %v3532_v20 = vpop.permute.xlu1 %1100 }
 0x1a6   :  { %1386 = vmatmul.mubr.bf16.gmra.mxu0 %v2394_v16 }
 0x1a7   :  { %1579 = vmatmul.mubr.bf16.gmra.mxu1 %v2394_v16  ;;  %1395 = vmatprep.mubr.bf16.mxu0 %v2395_v14  ;;  %v3530_v40 = vpop.permute.xlu0 %1906 }
 0x1a8   :  { %1588 = vmatprep.mubr.bf16.mxu1 %v2395_v14 }
 0x1aa   :  { %v1799_v52 = vpop.permute.xlu1 %1798 }
 0x1ac   :  { %v997_v18 = vpop.permute.xlu0 %996 }
 0x1ae   :  { %1396 = vmatmul.mubr.bf16.gmra.mxu0 %v2397_v30 }
 0x1af   :  { %1589 = vmatmul.mubr.bf16.gmra.mxu1 %v2397_v30  ;;  %1405 = vmatprep.mubr.bf16.mxu0 %v2398_v19 }
 0x1b0   :  { %1598 = vmatprep.mubr.bf16.mxu1 %v2398_v19 }
 0x1b6   :  { %1406 = vmatmul.mubr.bf16.gmra.mxu0 %v2400_v5 }
 0x1b7   :  { %1599 = vmatmul.mubr.bf16.gmra.mxu1 %v2400_v5  ;;  %1415 = vmatprep.mubr.bf16.mxu0 %v2401_v58 }
 0x1b8   :  { %1608 = vmatprep.mubr.bf16.mxu1 %v2401_v58 }
 0x1be   :  { %1416 = vmatmul.mubr.bf16.gmra.mxu0 %v2403_v12 }
 0x1bf   :  { %1609 = vmatmul.mubr.bf16.gmra.mxu1 %v2403_v12  ;;  %1425 = vmatprep.mubr.bf16.mxu0 %v2404_v48 }
 0x1c0   :  { %1618 = vmatprep.mubr.bf16.mxu1 %v2404_v48 }
 0x1c6   :  { %1426 = vmatmul.mubr.bf16.gmra.mxu0 %v2406_v54 }
 0x1c7   :  { %1619 = vmatmul.mubr.bf16.gmra.mxu1 %v2406_v54  ;;  %1435 = vmatprep.mubr.bf16.mxu0 %v2409_v8 }
 0x1c8   :  { %1628 = vmatprep.mubr.bf16.mxu1 %v2409_v8 }
 0x1ce   :  { %1436 = vmatmul.mubr.bf16.gmra.mxu0 %v2407_v13 }
 0x1cf   :  { %1629 = vmatmul.mubr.bf16.gmra.mxu1 %v2407_v13  ;;  %1445 = vmatprep.mubr.bf16.mxu0 %v2412_v51 }
 0x1d0   :  { %1638 = vmatprep.mubr.bf16.mxu1 %v2412_v51 }
 0x1d6   :  { %1446 = vmatmul.mubr.bf16.gmra.mxu0 %v2410_v10 }
 0x1d7   :  { %1639 = vmatmul.mubr.bf16.gmra.mxu1 %v2410_v10  ;;  %1455 = vmatprep.mubr.bf16.mxu0 %v2415_v50 }
 0x1d8   :  { %1648 = vmatprep.mubr.bf16.mxu1 %v2415_v50 }
 0x1de   :  { %1456 = vmatmul.mubr.bf16.gmra.mxu0 %v2413_v63 }
 0x1df   :  { %1649 = vmatmul.mubr.bf16.gmra.mxu1 %v2413_v63  ;;  %1465 = vmatprep.mubr.bf16.mxu0 %v2418_v38 }
 0x1e0   :  { %1658 = vmatprep.mubr.bf16.mxu1 %v2418_v38 }
 0x1e6   :  { %1466 = vmatmul.mubr.bf16.gmra.mxu0 %v2416_v6 }
 0x1e7   :  { %1659 = vmatmul.mubr.bf16.gmra.mxu1 %v2416_v6 }
 0x22e   :  { %v1317_v17 = vpop.f32.mrf.mxu0 }
 0x22f   :  { %v1510_v26 = vpop.f32.mrf.mxu1  ;;  %v1318_v25 = vadd.f32 %v1317_v17, %v997_v18 }
 0x230   :  { %v1319_v9 = vpop.f32.mrf.mxu0  ;;  %v1511_v33 = vadd.f32 %v1510_v26, %v997_v18 }
 0x231   :  { %v1512_v21 = vpop.f32.mrf.mxu1  ;;  %v1320_v1 = vadd.f32 %v1319_v9, %v997_v18  ;;  %v1669_v4 = vmax.f32 %v1318_v25, 0.0 }
 0x232   :  { %v1321_v47 = vpop.f32.mrf.mxu0  ;;  %v1513_v11 = vadd.f32 %v1512_v21, %v997_v18  ;;  %v1671_v7 = vmax.f32 %v1511_v33, 0.0  ;;  %v1009_v21 = vpop.permute.xlu0 %1008 }
 0x233   :  { %v1322_v15 = vadd.f32 %v1321_v47, %v1001_v32  ;;  %v1514_v34 = vpop.f32.mrf.mxu1  ;;  %v1670_v30 = vmax.f32 %v1320_v1, 0.0  ;;  %v1925_v51 = vmul.f32 %v1799_v52, %v1669_v4 }
 0x234   :  { %v1515_v39 = vadd.f32 %v1514_v34, %v1001_v32  ;;  %v1323_v42 = vpop.f32.mrf.mxu0  ;;  %v1672_v12 = vmax.f32 %v1513_v11, 0.0  ;;  %v1927_v10 = vmul.f32 %v1799_v52, %v1671_v7 }
 0x235   :  { %v1673_v23 = vmax.f32 %v1322_v15, 0.0  ;;  %v1324_v16 = vadd.f32 %v1323_v42, %v1001_v32  ;;  %v1516_v14 = vpop.f32.mrf.mxu1  ;;  %v1926_v18 = vmul.f32 %v1799_v52, %v1670_v30 }
 0x236   :  { %v1675_v19 = vmax.f32 %v1515_v39, 0.0  ;;  %v1517_v5 = vadd.f32 %v1516_v14, %v1001_v32  ;;  %v1327_v58 = vpop.f32.mrf.mxu0  ;;  %v1807_v32 = vpop.permute.xlu1 %1806  ;;  %v1928_v33 = vmul.f32 %v1799_v52, %v1672_v12 }
 0x237   :  { %v1674_v48 = vmax.f32 %v1324_v16, 0.0  ;;  %v1328_v54 = vadd.f32 %v1327_v58, %v3484_v27  ;;  %v1520_v8 = vpop.f32.mrf.mxu1  ;;  %v1929_v50 = vmul.f32 %v3479_v45, %v1673_v23 }
 0x238   :  { %v1676_v53 = vmax.f32 %v1517_v5, 0.0  ;;  %v1521_v35 = vadd.f32 %v1520_v8, %v3484_v27  ;;  %v1329_v13 = vpop.f32.mrf.mxu0  ;;  %v1931_v17 = vmul.f32 %v3479_v45, %v1675_v19 }
 0x239   :  { %v1677_v63 = vmax.f32 %v1328_v54, 0.0  ;;  %v1330_v38 = vadd.f32 %v1329_v13, %v3484_v27  ;;  %v1522_v6 = vpop.f32.mrf.mxu1  ;;  %v1930_v1 = vmul.f32 %v3479_v45, %v1674_v48  ;;  %v2053_v30 = vadd.f32 %v1929_v50, %v1925_v51 }
 0x23a   :  { %v1679_v26 = vmax.f32 %v1521_v35, 0.0  ;;  %v1523_v9 = vadd.f32 %v1522_v6, %v3484_v27  ;;  %v1331_v25 = vpop.f32.mrf.mxu0  ;;  %v1932_v47 = vmul.f32 %v3479_v45, %v1676_v53  ;;  %v2127_v58 = vadd.f32 %v1931_v17, %v1927_v10  ;;  %v1811_v51 = vpop.permute.xlu1 %1810 }
 0x23b   :  { %v1678_v11 = vmax.f32 %v1330_v38, 0.0  ;;  %v1524_v15 = vpop.f32.mrf.mxu1  ;;  %v1332_v34 = vadd.f32 %v1331_v25, %v1009_v21  ;;  %v1933_v4 = vmul.f32 %v1807_v32, %v1677_v63  ;;  %v2090_v8 = vadd.f32 %v1930_v1, %v1926_v18  ;;  %v1017_v1 = vpop.permute.xlu0 %1016 }
 0x23c   :  { %v1680_v39 = vmax.f32 %v1523_v9, 0.0  ;;  %v1333_v42 = vpop.f32.mrf.mxu0  ;;  %v1935_v7 = vmul.f32 %v1807_v32, %v1679_v26  ;;  %v1525_v23 = vadd.f32 %v1524_v15, %v1009_v21  ;;  %v2164_v53 = vadd.f32 %v1932_v47, %v1928_v33 }
 0x23d   :  { %v1526_v16 = vpop.f32.mrf.mxu1  ;;  %v1934_v14 = vmul.f32 %v1807_v32, %v1678_v11  ;;  %v1334_v19 = vadd.f32 %v1333_v42, %v1009_v21  ;;  %v1681_v27 = vmax.f32 %v1332_v34, 0.0  ;;  %v2054_v38 = vadd.f32 %v2053_v30, %v1933_v4 }
 0x23e   :  { %v1337_v5 = vpop.f32.mrf.mxu0  ;;  %v1936_v52 = vmul.f32 %v1807_v32, %v1680_v39  ;;  %v1527_v12 = vadd.f32 %v1526_v16, %v1009_v21  ;;  %v1683_v48 = vmax.f32 %v1525_v23, 0.0  ;;  %v2128_v6 = vadd.f32 %v2127_v58, %v1935_v7 }
 0x23f   :  { %v1338_v45 = vadd.f32 %v1337_v5, %v3488_v2  ;;  %v1530_v54 = vpop.f32.mrf.mxu1  ;;  %v1682_v35 = vmax.f32 %v1334_v19, 0.0  ;;  %v2091_v10 = vadd.f32 %v2090_v8, %v1934_v14  ;;  %v1937_v17 = vmul.f32 %v1811_v51, %v1681_v27 }
 0x240   :  { %v1531_v13 = vadd.f32 %v1530_v54, %v3488_v2  ;;  %v1339_v63 = vpop.f32.mrf.mxu0  ;;  %v1684_v26 = vmax.f32 %v1527_v12, 0.0  ;;  %v2165_v11 = vadd.f32 %v2164_v53, %v1936_v52  ;;  %v1939_v33 = vmul.f32 %v1811_v51, %v1683_v48 }
 0x241   :  { %v1685_v50 = vmax.f32 %v1338_v45, 0.0  ;;  %v1340_v9 = vadd.f32 %v1339_v63, %v3488_v2  ;;  %v1532_v32 = vpop.f32.mrf.mxu1  ;;  %v1938_v34 = vmul.f32 %v1811_v51, %v1682_v35 }
 0x242   :  { %v1687_v25 = vmax.f32 %v1531_v13, 0.0  ;;  %v1533_v21 = vadd.f32 %v1532_v32, %v3488_v2  ;;  %v1341_v18 = vpop.f32.mrf.mxu0  ;;  %v1940_v39 = vmul.f32 %v1811_v51, %v1684_v26  ;;  %v2055_v2 = vadd.f32 %v2054_v38, %v1937_v17 }
 0x243   :  { %v1686_v47 = vmax.f32 %v1340_v9, 0.0  ;;  %v1534_v15 = vpop.f32.mrf.mxu1  ;;  %v1342_v42 = vadd.f32 %v1341_v18, %v1017_v1  ;;  %v1941_v4 = vmul.f32 %v3486_v43, %v1685_v50  ;;  %v2129_v58 = vadd.f32 %v2128_v6, %v1939_v33  ;;  %v1819_v50 = vpop.permute.xlu1 %1818 }
 0x244   :  { %v1943_v7 = vmul.f32 %v3486_v43, %v1687_v25  ;;  %v1688_v23 = vmax.f32 %v1533_v21, 0.0  ;;  %v1343_v16 = vpop.f32.mrf.mxu0  ;;  %v1535_v14 = vadd.f32 %v1534_v15, %v1017_v1  ;;  %v2092_v54 = vadd.f32 %v2091_v10, %v1938_v34 }
 0x245   :  { %v1942_v30 = vmul.f32 %v3486_v43, %v1686_v47  ;;  %v1536_v19 = vpop.f32.mrf.mxu1  ;;  %v1344_v27 = vadd.f32 %v1343_v16, %v1017_v1  ;;  %v1689_v5 = vmax.f32 %v1342_v42, 0.0  ;;  %v2166_v8 = vadd.f32 %v2165_v11, %v1940_v39 }
 0x246   :  { %v1944_v52 = vmul.f32 %v3486_v43, %v1688_v23  ;;  %v1347_v12 = vpop.f32.mrf.mxu0  ;;  %v1537_v48 = vadd.f32 %v1536_v19, %v1017_v1  ;;  %v1691_v45 = vmax.f32 %v1535_v14, 0.0  ;;  %v2056_v38 = vadd.f32 %v2055_v2, %v1941_v4  ;;  %v1025_v1 = vpop.permute.xlu0 %1024 }
 0x247   :  { %v1348_v53 = vadd.f32 %v1347_v12, %v3492_v60  ;;  %v1540_v35 = vpop.f32.mrf.mxu1  ;;  %v1690_v13 = vmax.f32 %v1344_v27, 0.0  ;;  %v2130_v9 = vadd.f32 %v2129_v58, %v1943_v7  ;;  %v1945_v17 = vmul.f32 %v1819_v50, %v1689_v5 }
 0x248   :  { %v1541_v63 = vadd.f32 %v1540_v35, %v3492_v60  ;;  %v1692_v26 = vmax.f32 %v1537_v48, 0.0  ;;  %v1349_v51 = vpop.f32.mrf.mxu0  ;;  %v2093_v25 = vadd.f32 %v2092_v54, %v1942_v30  ;;  %v1947_v11 = vmul.f32 %v1819_v50, %v1691_v45 }
 0x249   :  { %v1693_v32 = vmax.f32 %v1348_v53, 0.0  ;;  %v1350_v43 = vadd.f32 %v1349_v51, %v3492_v60  ;;  %v1542_v6 = vpop.f32.mrf.mxu1  ;;  %v2167_v18 = vadd.f32 %v2166_v8, %v1944_v52  ;;  %v1946_v15 = vmul.f32 %v1819_v50, %v1690_v13 }
 0x24a   :  { %v1695_v21 = vmax.f32 %v1541_v63, 0.0  ;;  %v1543_v10 = vadd.f32 %v1542_v6, %v3492_v60  ;;  %v1351_v33 = vpop.f32.mrf.mxu0  ;;  %v1948_v34 = vmul.f32 %v1819_v50, %v1692_v26  ;;  %v2057_v19 = vadd.f32 %v2056_v38, %v1945_v17  ;;  %v1827_v63 = vpop.permute.xlu1 %1826 }
 0x24b   :  { %v1694_v47 = vmax.f32 %v1350_v43, 0.0  ;;  %v1544_v39 = vpop.f32.mrf.mxu1  ;;  %v1352_v42 = vadd.f32 %v1351_v33, %v1025_v1  ;;  %v1949_v4 = vmul.f32 %v3490_v61, %v1693_v32  ;;  %v2131_v52 = vadd.f32 %v2130_v9, %v1947_v11 }
 0x24c   :  { %v1951_v7 = vmul.f32 %v3490_v61, %v1695_v21  ;;  %v1696_v23 = vmax.f32 %v1543_v10, 0.0  ;;  %v1545_v16 = vadd.f32 %v1544_v39, %v1025_v1  ;;  %v1353_v14 = vpop.f32.mrf.mxu0  ;;  %v2094_v45 = vadd.f32 %v2093_v25, %v1946_v15 }
 0x24d   :  { %v1950_v30 = vmul.f32 %v3490_v61, %v1694_v47  ;;  %v1697_v60 = vmax.f32 %v1352_v42, 0.0  ;;  %v1354_v2 = vadd.f32 %v1353_v14, %v1025_v1  ;;  %v1546_v27 = vpop.f32.mrf.mxu1  ;;  %v2168_v54 = vadd.f32 %v2167_v18, %v1948_v34  ;;  %v1033_v18 = vpop.permute.xlu0 %1032 }
 0x24e   :  { %v1952_v5 = vmul.f32 %v3490_v61, %v1696_v23  ;;  %v1699_v58 = vmax.f32 %v1545_v16, 0.0  ;;  %v1547_v12 = vadd.f32 %v1546_v27, %v1025_v1  ;;  %v1357_v48 = vpop.f32.mrf.mxu0  ;;  %v2058_v26 = vadd.f32 %v2057_v19, %v1949_v4 }
 0x24f   :  { %v1698_v8 = vmax.f32 %v1354_v2, 0.0  ;;  %v1358_v53 = vadd.f32 %v1357_v48, %v3496_v0  ;;  %v1550_v35 = vpop.f32.mrf.mxu1  ;;  %v2132_v50 = vadd.f32 %v2131_v52, %v1951_v7  ;;  %v1953_v32 = vmul.f32 %v1827_v63, %v1697_v60 }
 0x250   :  { %v1700_v13 = vmax.f32 %v1547_v12, 0.0  ;;  %v1551_v51 = vadd.f32 %v1550_v35, %v3496_v0  ;;  %v1359_v38 = vpop.f32.mrf.mxu0  ;;  %v2095_v9 = vadd.f32 %v2094_v45, %v1950_v30  ;;  %v1955_v17 = vmul.f32 %v1827_v63, %v1699_v58  ;;  %v1835_v45 = vpop.permute.xlu1 %1834 }
 0x251   :  { %v1701_v43 = vmax.f32 %v1358_v53, 0.0  ;;  %v1360_v61 = vadd.f32 %v1359_v38, %v3496_v0  ;;  %v1552_v6 = vpop.f32.mrf.mxu1  ;;  %v2169_v10 = vadd.f32 %v2168_v54, %v1952_v5  ;;  %v1954_v33 = vmul.f32 %v1827_v63, %v1698_v8 }
 0x252   :  { %v1703_v25 = vmax.f32 %v1551_v51, 0.0  ;;  %v1553_v21 = vadd.f32 %v1552_v6, %v3496_v0  ;;  %v1361_v11 = vpop.f32.mrf.mxu0  ;;  %v1956_v1 = vmul.f32 %v1827_v63, %v1700_v13  ;;  %v2059_v16 = vadd.f32 %v2058_v26, %v1953_v32 }
 0x253   :  { %v1702_v47 = vmax.f32 %v1360_v61, 0.0  ;;  %v1554_v15 = vpop.f32.mrf.mxu1  ;;  %v1362_v34 = vadd.f32 %v1361_v11, %v1033_v18  ;;  %v1957_v39 = vmul.f32 %v3494_v31, %v1701_v43  ;;  %v2133_v60 = vadd.f32 %v2132_v50, %v1955_v17 }
 0x254   :  { %v1959_v42 = vmul.f32 %v3494_v31, %v1703_v25  ;;  %v1704_v4 = vmax.f32 %v1553_v21, 0.0  ;;  %v1555_v7 = vadd.f32 %v1554_v15, %v1033_v18  ;;  %v1363_v23 = vpop.f32.mrf.mxu0  ;;  %v2096_v58 = vadd.f32 %v2095_v9, %v1954_v33  ;;  %v1041_v25 = vpop.permute.xlu0 %1040 }
 0x255   :  { %v1958_v14 = vmul.f32 %v3494_v31, %v1702_v47  ;;  %v1705_v30 = vmax.f32 %v1362_v34, 0.0  ;;  %v1364_v0 = vadd.f32 %v1363_v23, %v1033_v18  ;;  %v1556_v19 = vpop.f32.mrf.mxu1  ;;  %v2170_v12 = vadd.f32 %v2169_v10, %v1956_v1 }
 0x256   :  { %v1960_v2 = vmul.f32 %v3494_v31, %v1704_v4  ;;  %v1707_v27 = vmax.f32 %v1555_v7, 0.0  ;;  %v1557_v5 = vadd.f32 %v1556_v19, %v1033_v18  ;;  %v1367_v52 = vpop.f32.mrf.mxu0  ;;  %v2060_v53 = vadd.f32 %v2059_v16, %v1957_v39  ;;  %v1843_v16 = vpop.permute.xlu1 %1842 }
 0x257   :  { %v1706_v48 = vmax.f32 %v1364_v0, 0.0  ;;  %v1368_v54 = vadd.f32 %v1367_v52, %v3500_v28  ;;  %v1560_v8 = vpop.f32.mrf.mxu1  ;;  %v2134_v35 = vadd.f32 %v2133_v60, %v1959_v42  ;;  %v2097_v51 = vadd.f32 %v2096_v58, %v1958_v14 }
 0x258   :  { %v1708_v13 = vmax.f32 %v1557_v5, 0.0  ;;  %v1561_v63 = vadd.f32 %v1560_v8, %v3500_v28  ;;  %v1369_v26 = vpop.f32.mrf.mxu0  ;;  %v1961_v50 = vmul.f32 %v1835_v45, %v1705_v30  ;;  %v2171_v43 = vadd.f32 %v2170_v12, %v1960_v2 }
 0x259   :  { %v1709_v38 = vmax.f32 %v1368_v54, 0.0  ;;  %v1370_v31 = vadd.f32 %v1369_v26, %v3500_v28  ;;  %v1562_v32 = vpop.f32.mrf.mxu1  ;;  %v1963_v61 = vmul.f32 %v1835_v45, %v1707_v27  ;;  %v1962_v21 = vmul.f32 %v1835_v45, %v1706_v48 }
 0x25a   :  { %v1711_v9 = vmax.f32 %v1561_v63, 0.0  ;;  %v1563_v6 = vadd.f32 %v1562_v32, %v3500_v28  ;;  %v1371_v17 = vpop.f32.mrf.mxu0  ;;  %v1964_v10 = vmul.f32 %v1835_v45, %v1708_v13  ;;  %v2061_v42 = vadd.f32 %v2060_v53, %v1961_v50  ;;  %v1049_v32 = vpop.permute.xlu0 %1048 }
 0x25b   :  { %v1710_v11 = vmax.f32 %v1370_v31, 0.0  ;;  %v1564_v18 = vpop.f32.mrf.mxu1  ;;  %v1372_v33 = vadd.f32 %v1371_v17, %v1041_v25  ;;  %v1965_v1 = vmul.f32 %v3498_v57, %v1709_v38  ;;  %v2135_v14 = vadd.f32 %v2134_v35, %v1963_v61 }
 0x25c   :  { %v1967_v47 = vmul.f32 %v3498_v57, %v1711_v9  ;;  %v1712_v15 = vmax.f32 %v1563_v6, 0.0  ;;  %v1565_v34 = vadd.f32 %v1564_v18, %v1041_v25  ;;  %v1373_v39 = vpop.f32.mrf.mxu0  ;;  %v2098_v2 = vadd.f32 %v2097_v51, %v1962_v21 }
 0x25d   :  { %v1966_v4 = vmul.f32 %v3498_v57, %v1710_v11  ;;  %v1713_v7 = vmax.f32 %v1372_v33, 0.0  ;;  %v1374_v23 = vadd.f32 %v1373_v39, %v1041_v25  ;;  %v1566_v28 = vpop.f32.mrf.mxu1  ;;  %v2172_v27 = vadd.f32 %v2171_v43, %v1964_v10 }
 0x25e   :  { %v1968_v30 = vmul.f32 %v3498_v57, %v1712_v15  ;;  %v1715_v0 = vmax.f32 %v1565_v34, 0.0  ;;  %v1567_v19 = vadd.f32 %v1566_v28, %v1041_v25  ;;  %v1377_v60 = vpop.f32.mrf.mxu0  ;;  %v2062_v12 = vadd.f32 %v2061_v42, %v1965_v1  ;;  %v1851_v25 = vpop.permute.xlu1 %1850 }
 0x25f   :  { %v1714_v5 = vmax.f32 %v1374_v23, 0.0  ;;  %v1378_v52 = vadd.f32 %v1377_v60, %v3504_v44  ;;  %v1570_v58 = vpop.f32.mrf.mxu1  ;;  %v2136_v48 = vadd.f32 %v2135_v14, %v1967_v47  ;;  %v2099_v53 = vadd.f32 %v2098_v2, %v1966_v4 }
 0x260   :  { %v1716_v45 = vmax.f32 %v1567_v19, 0.0  ;;  %v1571_v54 = vadd.f32 %v1570_v58, %v3504_v44  ;;  %v1379_v8 = vpop.f32.mrf.mxu0  ;;  %v1969_v13 = vmul.f32 %v1843_v16, %v1713_v7  ;;  %v2173_v26 = vadd.f32 %v2172_v27, %v1968_v30 }
 0x261   :  { %v1717_v35 = vmax.f32 %v1378_v52, 0.0  ;;  %v1380_v57 = vadd.f32 %v1379_v8, %v3504_v44  ;;  %v1572_v63 = vpop.f32.mrf.mxu1  ;;  %v1971_v50 = vmul.f32 %v1843_v16, %v1715_v0  ;;  %v1970_v43 = vmul.f32 %v1843_v16, %v1714_v5 }
 0x262   :  { %v1719_v51 = vmax.f32 %v1571_v54, 0.0  ;;  %v1573_v38 = vadd.f32 %v1572_v63, %v3504_v44  ;;  %v1381_v31 = vpop.f32.mrf.mxu0  ;;  %v1972_v61 = vmul.f32 %v1843_v16, %v1716_v45  ;;  %v2063_v1 = vadd.f32 %v2062_v12, %v1969_v13  ;;  %v1859_v45 = vpop.permute.xlu1 %1858 }
 0x263   :  { %v1718_v9 = vmax.f32 %v1380_v57, 0.0  ;;  %v1574_v6 = vpop.f32.mrf.mxu1  ;;  %v1382_v17 = vadd.f32 %v1381_v31, %v1049_v32  ;;  %v1973_v21 = vmul.f32 %v3502_v24, %v1717_v35  ;;  %v2137_v39 = vadd.f32 %v2136_v48, %v1971_v50  ;;  %v1057_v57 = vpop.permute.xlu0 %1056 }
 0x264   :  { %v1975_v10 = vmul.f32 %v3502_v24, %v1719_v51  ;;  %v1720_v11 = vmax.f32 %v1573_v38, 0.0  ;;  %v1575_v18 = vadd.f32 %v1574_v6, %v1049_v32  ;;  %v1383_v33 = vpop.f32.mrf.mxu0  ;;  %v2100_v28 = vadd.f32 %v2099_v53, %v1970_v43 }
 0x265   :  { %v1974_v47 = vmul.f32 %v3502_v24, %v1718_v9  ;;  %v1721_v15 = vmax.f32 %v1382_v17, 0.0  ;;  %v1384_v44 = vadd.f32 %v1383_v33, %v1049_v32  ;;  %v1576_v34 = vpop.f32.mrf.mxu1  ;;  %v2174_v16 = vadd.f32 %v2173_v26, %v1972_v61 }
 0x266   :  { %v1976_v42 = vmul.f32 %v3502_v24, %v1720_v11  ;;  %v1723_v4 = vmax.f32 %v1575_v18, 0.0  ;;  %v1577_v7 = vadd.f32 %v1576_v34, %v1049_v32  ;;  %v1387_v23 = vpop.f32.mrf.mxu0  ;;  %v2064_v19 = vadd.f32 %v2063_v1, %v1973_v21 }
 0x267   :  { %v1722_v14 = vmax.f32 %v1384_v44, 0.0  ;;  %v1388_v30 = vadd.f32 %v1387_v23, %v3508_v49  ;;  %v1580_v0 = vpop.f32.mrf.mxu1  ;;  %v2138_v60 = vadd.f32 %v2137_v39, %v1975_v10  ;;  %v2101_v52 = vadd.f32 %v2100_v28, %v1974_v47  ;;  %v1867_v23 = vpop.permute.xlu1 %1866 }
 0x268   :  { %v1724_v2 = vmax.f32 %v1577_v7, 0.0  ;;  %v1581_v27 = vadd.f32 %v1580_v0, %v3508_v49  ;;  %v1389_v5 = vpop.f32.mrf.mxu0  ;;  %v1977_v58 = vmul.f32 %v1851_v25, %v1721_v15  ;;  %v2175_v54 = vadd.f32 %v2174_v16, %v1976_v42 }
 0x269   :  { %v1725_v12 = vmax.f32 %v1388_v30, 0.0  ;;  %v1390_v24 = vadd.f32 %v1389_v5, %v3508_v49  ;;  %v1582_v48 = vpop.f32.mrf.mxu1  ;;  %v1979_v8 = vmul.f32 %v1851_v25, %v1723_v4  ;;  %v1978_v63 = vmul.f32 %v1851_v25, %v1722_v14 }
 0x26a   :  { %v1727_v53 = vmax.f32 %v1581_v27, 0.0  ;;  %v1583_v13 = vadd.f32 %v1582_v48, %v3508_v49  ;;  %v1391_v35 = vpop.f32.mrf.mxu0  ;;  %v1980_v26 = vmul.f32 %v1851_v25, %v1724_v2  ;;  %v2065_v6 = vadd.f32 %v2064_v19, %v1977_v58  ;;  %v1065_v58 = vpop.permute.xlu0 %1064 }
 0x26b   :  { %v1726_v50 = vmax.f32 %v1390_v24, 0.0  ;;  %v1584_v51 = vpop.f32.mrf.mxu1  ;;  %v1392_v38 = vadd.f32 %v1391_v35, %v1057_v57  ;;  %v1981_v31 = vmul.f32 %v3506_v46, %v1725_v12  ;;  %v2139_v11 = vadd.f32 %v2138_v60, %v1979_v8 }
 0x26c   :  { %v1983_v32 = vmul.f32 %v3506_v46, %v1727_v53  ;;  %v1728_v43 = vmax.f32 %v1583_v13, 0.0  ;;  %v1585_v61 = vadd.f32 %v1584_v51, %v1057_v57  ;;  %v1393_v9 = vpop.f32.mrf.mxu0  ;;  %v2102_v47 = vadd.f32 %v2101_v52, %v1978_v63 }
 0x26d   :  { %v1982_v17 = vmul.f32 %v3506_v46, %v1726_v50  ;;  %v1729_v21 = vmax.f32 %v1392_v38, 0.0  ;;  %v1394_v10 = vadd.f32 %v1393_v9, %v1057_v57  ;;  %v1586_v49 = vpop.f32.mrf.mxu1  ;;  %v2176_v15 = vadd.f32 %v2175_v54, %v1980_v26 }
 0x26e   :  { %v1984_v18 = vmul.f32 %v3506_v46, %v1728_v43  ;;  %v1731_v25 = vmax.f32 %v1585_v61, 0.0  ;;  %v1587_v33 = vadd.f32 %v1586_v49, %v1057_v57  ;;  %v1397_v1 = vpop.f32.mrf.mxu0  ;;  %v2066_v42 = vadd.f32 %v2065_v6, %v1981_v31 }
 0x26f   :  { %v1730_v44 = vmax.f32 %v1394_v10, 0.0  ;;  %v1398_v34 = vadd.f32 %v1397_v1, %v3512_v3  ;;  %v1590_v39 = vpop.f32.mrf.mxu1  ;;  %v2140_v4 = vadd.f32 %v2139_v11, %v1983_v32  ;;  %v2103_v14 = vadd.f32 %v2102_v47, %v1982_v17 }
 0x270   :  { %v1732_v7 = vmax.f32 %v1587_v33, 0.0  ;;  %v1591_v28 = vadd.f32 %v1590_v39, %v3512_v3  ;;  %v1399_v16 = vpop.f32.mrf.mxu0  ;;  %v1985_v30 = vmul.f32 %v1859_v45, %v1729_v21  ;;  %v2177_v60 = vadd.f32 %v2176_v15, %v1984_v18 }
 0x271   :  { %v1733_v0 = vmax.f32 %v1398_v34, 0.0  ;;  %v1400_v46 = vadd.f32 %v1399_v16, %v3512_v3  ;;  %v1592_v19 = vpop.f32.mrf.mxu1  ;;  %v1987_v2 = vmul.f32 %v1859_v45, %v1731_v25  ;;  %v1986_v12 = vmul.f32 %v1859_v45, %v1730_v44 }
 0x272   :  { %v1735_v27 = vmax.f32 %v1591_v28, 0.0  ;;  %v1593_v5 = vadd.f32 %v1592_v19, %v3512_v3  ;;  %v1401_v52 = vpop.f32.mrf.mxu0  ;;  %v1988_v24 = vmul.f32 %v1859_v45, %v1732_v7  ;;  %v2067_v26 = vadd.f32 %v2066_v42, %v1985_v30  ;;  %v3598_v45 = vpop.permute.xlu1 %1874 }
 0x273   :  { %v1734_v48 = vmax.f32 %v1400_v46, 0.0  ;;  %v1594_v54 = vpop.f32.mrf.mxu1  ;;  %v1402_v8 = vadd.f32 %v1401_v52, %v1065_v58  ;;  %v1989_v53 = vmul.f32 %v3510_v41, %v1733_v0  ;;  %v2141_v31 = vadd.f32 %v2140_v4, %v1987_v2  ;;  %v1073_v7 = vpop.permute.xlu0 %1072 }
 0x274   :  { %v1991_v13 = vmul.f32 %v3510_v41, %v1735_v27  ;;  %v1736_v35 = vmax.f32 %v1593_v5, 0.0  ;;  %v1595_v57 = vadd.f32 %v1594_v54, %v1065_v58  ;;  %v1403_v63 = vpop.f32.mrf.mxu0  ;;  %v2104_v6 = vadd.f32 %v2103_v14, %v1986_v12 }
 0x275   :  { %v1990_v50 = vmul.f32 %v3510_v41, %v1734_v48  ;;  %v1737_v51 = vmax.f32 %v1402_v8, 0.0  ;;  %v1404_v38 = vadd.f32 %v1403_v63, %v1065_v58  ;;  %v1596_v3 = vpop.f32.mrf.mxu1  ;;  %v2178_v17 = vadd.f32 %v2177_v60, %v1988_v24 }
 0x276   :  { %v1992_v32 = vmul.f32 %v3510_v41, %v1736_v35  ;;  %v1739_v43 = vmax.f32 %v1595_v57, 0.0  ;;  %v1597_v61 = vadd.f32 %v1596_v3, %v1065_v58  ;;  %v1407_v9 = vpop.f32.mrf.mxu0  ;;  %v2068_v11 = vadd.f32 %v2067_v26, %v1989_v53  ;;  %v3604_v60 = vpop.permute.xlu1 %1882 }
 0x277   :  { %v1738_v21 = vmax.f32 %v1404_v38, 0.0  ;;  %v1408_v10 = vadd.f32 %v1407_v9, %v3516_v37  ;;  %v1600_v49 = vpop.f32.mrf.mxu1  ;;  %v2142_v18 = vadd.f32 %v2141_v31, %v1991_v13  ;;  %v2105_v47 = vadd.f32 %v2104_v6, %v1990_v50  ;;  %v1081_v6 = vpop.permute.xlu0 %1080 }
 0x278   :  { %v1740_v25 = vmax.f32 %v1597_v61, 0.0  ;;  %v1601_v33 = vadd.f32 %v1600_v49, %v3516_v37  ;;  %v1409_v1 = vpop.f32.mrf.mxu0  ;;  %v1993_v15 = vmul.f32 %v1867_v23, %v1737_v51  ;;  %v2179_v39 = vadd.f32 %v2178_v17, %v1992_v32 }
 0x279   :  { %v1741_v41 = vmax.f32 %v1408_v10, 0.0  ;;  %v1410_v44 = vadd.f32 %v1409_v1, %v3516_v37  ;;  %v1602_v34 = vpop.f32.mrf.mxu1  ;;  %v1995_v42 = vmul.f32 %v1867_v23, %v1739_v43  ;;  %v1994_v14 = vmul.f32 %v1867_v23, %v1738_v21 }
 0x27a   :  { %v1743_v4 = vmax.f32 %v1601_v33, 0.0  ;;  %v1603_v28 = vadd.f32 %v1602_v34, %v3516_v37  ;;  %v1411_v16 = vpop.f32.mrf.mxu0  ;;  %v1996_v30 = vmul.f32 %v1867_v23, %v1740_v25  ;;  %v2069_v12 = vadd.f32 %v2068_v11, %v1993_v15  ;;  %v3614_v49 = vpop.permute.xlu1 %1890 }
 0x27b   :  { %v1742_v0 = vmax.f32 %v1410_v44, 0.0  ;;  %v1412_v46 = vadd.f32 %v1411_v16, %v1073_v7  ;;  %v1604_v19 = vpop.f32.mrf.mxu1  ;;  %v1997_v2 = vmul.f32 %v3514_v59, %v1741_v41  ;;  %v2143_v8 = vadd.f32 %v2142_v18, %v1995_v42 }
 0x27c   :  { %v1999_v27 = vmul.f32 %v3514_v59, %v1743_v4  ;;  %v1744_v5 = vmax.f32 %v1603_v28, 0.0  ;;  %v1605_v52 = vadd.f32 %v1604_v19, %v1073_v7  ;;  %v1413_v58 = vpop.f32.mrf.mxu0  ;;  %v2106_v57 = vadd.f32 %v2105_v47, %v1994_v14 }
 0x27d   :  { %v1998_v24 = vmul.f32 %v3514_v59, %v1742_v0  ;;  %v1745_v48 = vmax.f32 %v1412_v46, 0.0  ;;  %v1414_v37 = vadd.f32 %v1413_v58, %v1073_v7  ;;  %v1606_v54 = vpop.f32.mrf.mxu1  ;;  %v2180_v63 = vadd.f32 %v2179_v39, %v1996_v30 }
 0x27e   :  { %v2000_v23 = vmul.f32 %v3514_v59, %v1744_v5  ;;  %v1747_v53 = vmax.f32 %v1605_v52, 0.0  ;;  %v1607_v13 = vadd.f32 %v1606_v54, %v1073_v7  ;;  %v1417_v35 = vpop.f32.mrf.mxu0  ;;  %v2070_v38 = vadd.f32 %v2069_v12, %v1997_v2 }
 0x27f   :  { %v1746_v26 = vmax.f32 %v1414_v37, 0.0  ;;  %v1418_v50 = vadd.f32 %v1417_v35, %v3520_v29  ;;  %v1610_v51 = vpop.f32.mrf.mxu1  ;;  %v2144_v3 = vadd.f32 %v2143_v8, %v1999_v27  ;;  %v2107_v61 = vadd.f32 %v2106_v57, %v1998_v24  ;;  %v3625_v24 = vpop.permute.xlu1 %1898 }
 0x280   :  { %v1748_v31 = vmax.f32 %v1607_v13, 0.0  ;;  %v1611_v32 = vadd.f32 %v1610_v51, %v3520_v29  ;;  %v1419_v43 = vpop.f32.mrf.mxu0  ;;  %v2001_v9 = vmul.f32 %v3598_v45, %v1745_v48  ;;  %v2181_v10 = vadd.f32 %v2180_v63, %v2000_v23  ;;  %v1089_v63 = vpop.permute.xlu0 %1088 }
 0x281   :  { %v1749_v59 = vmax.f32 %v1418_v50, 0.0  ;;  %v1420_v17 = vadd.f32 %v1419_v43, %v3520_v29  ;;  %v1612_v21 = vpop.f32.mrf.mxu1  ;;  %v2003_v11 = vmul.f32 %v3598_v45, %v1747_v53  ;;  %v2002_v1 = vmul.f32 %v3598_v45, %v1746_v26 }
 0x282   :  { %v1751_v18 = vmax.f32 %v1611_v32, 0.0  ;;  %v1613_v25 = vadd.f32 %v1612_v21, %v3520_v29  ;;  %v1421_v33 = vpop.f32.mrf.mxu0  ;;  %v2004_v47 = vmul.f32 %v3598_v45, %v1748_v31  ;;  %v2071_v28 = vadd.f32 %v2070_v38, %v2001_v9 }
 0x283   :  { %v1750_v15 = vmax.f32 %v1420_v17, 0.0  ;;  %v1422_v41 = vadd.f32 %v1421_v33, %v1081_v6  ;;  %v1614_v44 = vpop.f32.mrf.mxu1  ;;  %v2005_v34 = vmul.f32 %v3518_v55, %v1749_v59  ;;  %v2145_v0 = vadd.f32 %v2144_v3, %v2003_v11 }
 0x284   :  { %v2007_v39 = vmul.f32 %v3518_v55, %v1751_v18  ;;  %v1752_v42 = vmax.f32 %v1613_v25, 0.0  ;;  %v1615_v4 = vadd.f32 %v1614_v44, %v1081_v6  ;;  %v1423_v7 = vpop.f32.mrf.mxu0  ;;  %v2108_v27 = vadd.f32 %v2107_v61, %v2002_v1  ;;  %v3637_v1 = vpop.permute.xlu1 %1902 }
 0x285   :  { %v2006_v16 = vmul.f32 %v3518_v55, %v1750_v15  ;;  %v1753_v14 = vmax.f32 %v1422_v41, 0.0  ;;  %v1424_v29 = vadd.f32 %v1423_v7, %v1081_v6  ;;  %v1616_v30 = vpop.f32.mrf.mxu1  ;;  %v2182_v5 = vadd.f32 %v2181_v10, %v2004_v47 }
 0x286   :  { %v2008_v46 = vmul.f32 %v3518_v55, %v1752_v42  ;;  %v1755_v45 = vmax.f32 %v1615_v4, 0.0  ;;  %v1617_v19 = vadd.f32 %v1616_v30, %v1081_v6  ;;  %v1427_v2 = vpop.f32.mrf.mxu0  ;;  %v2072_v48 = vadd.f32 %v2071_v28, %v2005_v34 }
 0x287   :  { %v1754_v52 = vmax.f32 %v1424_v29, 0.0  ;;  %v1428_v58 = vadd.f32 %v1427_v2, %v3524_v36  ;;  %v1620_v12 = vpop.f32.mrf.mxu1  ;;  %v2146_v37 = vadd.f32 %v2145_v0, %v2007_v39  ;;  %v2109_v53 = vadd.f32 %v2108_v27, %v2006_v16  ;;  %v1097_v0 = vpop.permute.xlu0 %1096 }
 0x288   :  { %v1756_v54 = vmax.f32 %v1617_v19, 0.0  ;;  %v1621_v8 = vadd.f32 %v1620_v12, %v3524_v36  ;;  %v1429_v23 = vpop.f32.mrf.mxu0  ;;  %v2009_v55 = vmul.f32 %v3604_v60, %v1753_v14  ;;  %v2183_v26 = vadd.f32 %v2182_v5, %v2008_v46 }
 0x289   :  { %v1757_v13 = vmax.f32 %v1428_v58, 0.0  ;;  %v1430_v35 = vadd.f32 %v1429_v23, %v3524_v36  ;;  %v1622_v57 = vpop.f32.mrf.mxu1  ;;  %v2011_v50 = vmul.f32 %v3604_v60, %v1755_v45  ;;  %v2010_v31 = vmul.f32 %v3604_v60, %v1754_v52 }
 0x28a   :  { %v1759_v51 = vmax.f32 %v1621_v8, 0.0  ;;  %v1623_v38 = vadd.f32 %v1622_v57, %v3524_v36  ;;  %v1431_v3 = vpop.f32.mrf.mxu0  ;;  %v2012_v32 = vmul.f32 %v3604_v60, %v1756_v54  ;;  %v2073_v11 = vadd.f32 %v2072_v48, %v2009_v55  ;;  %v3646_v48 = vpop.permute.xlu1 %1112 }
 0x28b   :  { %v1758_v43 = vmax.f32 %v1430_v35, 0.0  ;;  %v1432_v61 = vadd.f32 %v1431_v3, %v1089_v63  ;;  %v1624_v9 = vpop.f32.mrf.mxu1  ;;  %v2013_v6 = vmul.f32 %v3522_v62, %v1757_v13  ;;  %v2147_v47 = vadd.f32 %v2146_v37, %v2011_v50 }
 0x28c   :  { %v2015_v59 = vmul.f32 %v3522_v62, %v1759_v51  ;;  %v1760_v17 = vmax.f32 %v1623_v38, 0.0  ;;  %v1625_v21 = vadd.f32 %v1624_v9, %v1089_v63  ;;  %v1433_v10 = vpop.f32.mrf.mxu0  ;;  %v2110_v34 = vadd.f32 %v2109_v53, %v2010_v31 }
 0x28d   :  { %v2014_v18 = vmul.f32 %v3522_v62, %v1758_v43  ;;  %v1761_v25 = vmax.f32 %v1432_v61, 0.0  ;;  %v1434_v36 = vadd.f32 %v1433_v10, %v1089_v63  ;;  %v1626_v33 = vpop.f32.mrf.mxu1  ;;  %v2184_v39 = vadd.f32 %v2183_v26, %v2012_v32  ;;  %v1105_v61 = vpop.permute.xlu0 %1104 }
 0x28e   :  { %v2016_v60 = vmul.f32 %v3522_v62, %v1760_v17  ;;  %v1763_v15 = vmax.f32 %v1625_v21, 0.0  ;;  %v1627_v41 = vadd.f32 %v1626_v33, %v1089_v63  ;;  %v1437_v44 = vpop.f32.mrf.mxu0  ;;  %v2074_v28 = vadd.f32 %v2073_v11, %v2013_v6  ;;  %v3656_v33 = vpop.permute.xlu1 %1116 }
 0x28f   :  { %v1762_v42 = vmax.f32 %v1434_v36, 0.0  ;;  %v1438_v4 = vadd.f32 %v1437_v44, %v3528_v56  ;;  %v1630_v7 = vpop.f32.mrf.mxu1  ;;  %v2148_v16 = vadd.f32 %v2147_v47, %v2015_v59  ;;  %v2111_v46 = vadd.f32 %v2110_v34, %v2014_v18 }
 0x290   :  { %v1764_v14 = vmax.f32 %v1627_v41, 0.0  ;;  %v1631_v29 = vadd.f32 %v1630_v7, %v3528_v56  ;;  %v1439_v30 = vpop.f32.mrf.mxu0  ;;  %v2017_v45 = vmul.f32 %v3614_v49, %v1761_v25  ;;  %v2185_v27 = vadd.f32 %v2184_v39, %v2016_v60 }
 0x291   :  { %v1765_v62 = vmax.f32 %v1438_v4, 0.0  ;;  %v1440_v19 = vadd.f32 %v1439_v30, %v3528_v56  ;;  %v1632_v2 = vpop.f32.mrf.mxu1  ;;  %v2019_v5 = vmul.f32 %v3614_v49, %v1763_v15  ;;  %v2018_v37 = vmul.f32 %v3614_v49, %v1762_v42 }
 0x292   :  { %v1767_v52 = vmax.f32 %v1631_v29, 0.0  ;;  %v1633_v58 = vadd.f32 %v1632_v2, %v3528_v56  ;;  %v1441_v12 = vpop.f32.mrf.mxu0  ;;  %v2020_v54 = vmul.f32 %v3614_v49, %v1764_v14  ;;  %v2075_v26 = vadd.f32 %v2074_v28, %v2017_v45 }
 0x293   :  { %v1766_v8 = vmax.f32 %v1440_v19, 0.0  ;;  %v1442_v23 = vadd.f32 %v1441_v12, %v1097_v0  ;;  %v1634_v53 = vpop.f32.mrf.mxu1  ;;  %v2021_v55 = vmul.f32 %v3526_v22, %v1765_v62  ;;  %v2149_v3 = vadd.f32 %v2148_v16, %v2019_v5  ;;  %v1109_v19 = vpop.permute.xlu0 %1108 }
 0x294   :  { %v2023_v13 = vmul.f32 %v3526_v22, %v1767_v52  ;;  %v1768_v35 = vmax.f32 %v1633_v58, 0.0  ;;  %v1635_v57 = vadd.f32 %v1634_v53, %v1097_v0  ;;  %v1443_v63 = vpop.f32.mrf.mxu0  ;;  %v2112_v9 = vadd.f32 %v2111_v46, %v2018_v37 }
 0x295   :  { %v2022_v56 = vmul.f32 %v3526_v22, %v1766_v8  ;;  %v1769_v50 = vmax.f32 %v1442_v23, 0.0  ;;  %v1444_v51 = vadd.f32 %v1443_v63, %v1097_v0  ;;  %v1636_v38 = vpop.f32.mrf.mxu1  ;;  %v2186_v6 = vadd.f32 %v2185_v27, %v2020_v54  ;;  %v1911_v8 = vpop.permute.xlu1 %1910 }
 0x296   :  { %v2024_v31 = vmul.f32 %v3526_v22, %v1768_v35  ;;  %v1771_v49 = vmax.f32 %v1635_v57, 0.0  ;;  %v1637_v32 = vadd.f32 %v1636_v38, %v1097_v0  ;;  %v1447_v43 = vpop.f32.mrf.mxu0  ;;  %v2076_v10 = vadd.f32 %v2075_v26, %v2021_v55 }
 0x297   :  { %v1770_v59 = vmax.f32 %v1444_v51, 0.0  ;;  %v1448_v17 = vadd.f32 %v1447_v43, %v3532_v20  ;;  %v1640_v21 = vpop.f32.mrf.mxu1  ;;  %v2150_v11 = vadd.f32 %v2149_v3, %v2023_v13  ;;  %v2113_v47 = vadd.f32 %v2112_v9, %v2022_v56 }
 0x298   :  { %v1772_v18 = vmax.f32 %v1637_v32, 0.0  ;;  %v1641_v25 = vadd.f32 %v1640_v21, %v3532_v20  ;;  %v1449_v36 = vpop.f32.mrf.mxu0  ;;  %v2025_v22 = vmul.f32 %v3625_v24, %v1769_v50  ;;  %v2187_v44 = vadd.f32 %v2186_v6, %v2024_v31 }
 0x299   :  { %v1773_v60 = vmax.f32 %v1448_v17, 0.0  ;;  %v1450_v15 = vadd.f32 %v1449_v36, %v3532_v20  ;;  %v1642_v41 = vpop.f32.mrf.mxu1  ;;  %v2027_v34 = vmul.f32 %v3625_v24, %v1771_v49  ;;  %v2026_v7 = vmul.f32 %v3625_v24, %v1770_v59 }
 0x29a   :  { %v1775_v39 = vmax.f32 %v1641_v25, 0.0  ;;  %v1643_v42 = vadd.f32 %v1642_v41, %v3532_v20  ;;  %v1451_v4 = vpop.f32.mrf.mxu0  ;;  %v2028_v28 = vmul.f32 %v3625_v24, %v1772_v18  ;;  %v2077_v2 = vadd.f32 %v2076_v10, %v2025_v22  ;;  %v1915_v22 = vpop.permute.xlu1 %1914 }
 0x29b   :  { %v1774_v16 = vmax.f32 %v1450_v15, 0.0  ;;  %v1452_v14 = vadd.f32 %v1451_v4, %v1105_v61  ;;  %v1644_v29 = vpop.f32.mrf.mxu1  ;;  %v2029_v30 = vmul.f32 %v3637_v1, %v1773_v60  ;;  %v2151_v58 = vadd.f32 %v2150_v11, %v2027_v34 }
 0x29c   :  { %v2031_v0 = vmul.f32 %v3637_v1, %v1775_v39  ;;  %v1776_v46 = vmax.f32 %v1643_v42, 0.0  ;;  %v1645_v45 = vadd.f32 %v1644_v29, %v1105_v61  ;;  %v1453_v62 = vpop.f32.mrf.mxu0  ;;  %v2114_v23 = vadd.f32 %v2113_v47, %v2026_v7 }
 0x29d   :  { %v2030_v27 = vmul.f32 %v3637_v1, %v1774_v16  ;;  %v1777_v20 = vmax.f32 %v1452_v14, 0.0  ;;  %v1454_v5 = vadd.f32 %v1453_v62, %v1105_v61  ;;  %v1646_v52 = vpop.f32.mrf.mxu1  ;;  %v2188_v53 = vadd.f32 %v2187_v44, %v2028_v28 }
 0x29e   :  { %v2032_v24 = vmul.f32 %v3637_v1, %v1776_v46  ;;  %v1779_v12 = vmax.f32 %v1645_v45, 0.0  ;;  %v1647_v37 = vadd.f32 %v1646_v52, %v1105_v61  ;;  %v1457_v54 = vpop.f32.mrf.mxu0  ;;  %v2078_v57 = vadd.f32 %v2077_v2, %v2029_v30 }
 0x29f   :  { %v1778_v55 = vmax.f32 %v1454_v5, 0.0  ;;  %v1458_v13 = vadd.f32 %v1457_v54, %v1109_v19  ;;  %v1650_v35 = vpop.f32.mrf.mxu1  ;;  %v2152_v63 = vadd.f32 %v2151_v58, %v2031_v0  ;;  %v2115_v51 = vadd.f32 %v2114_v23, %v2030_v27  ;;  %v1121_v0 = vpop.permute.xlu0 %1120 }
 0x2a0   :  { %v1780_v26 = vmax.f32 %v1647_v37, 0.0  ;;  %v1651_v56 = vadd.f32 %v1650_v35, %v1109_v19  ;;  %v1459_v50 = vpop.f32.mrf.mxu0  ;;  %v2033_v38 = vmul.f32 %v3530_v40, %v1777_v20  ;;  %v2189_v49 = vadd.f32 %v2188_v53, %v2032_v24  ;;  %v1919_v54 = vpop.permute.xlu1 %1918 }
 0x2a1   :  { %v1781_v3 = vmax.f32 %v1458_v13, 0.0  ;;  %v1460_v31 = vadd.f32 %v1459_v50, %v1109_v19  ;;  %v1652_v1 = vpop.f32.mrf.mxu1  ;;  %v2035_v32 = vmul.f32 %v3530_v40, %v1779_v12  ;;  %v2034_v6 = vmul.f32 %v3530_v40, %v1778_v55 }
 0x2a2   :  { %v1783_v43 = vmax.f32 %v1651_v56, 0.0  ;;  %v1653_v61 = vadd.f32 %v1652_v1, %v1109_v19  ;;  %v1461_v9 = vpop.f32.mrf.mxu0  ;;  %v2036_v59 = vmul.f32 %v3530_v40, %v1780_v26  ;;  %v2079_v60 = vadd.f32 %v2078_v57, %v2033_v38 }
 0x2a3   :  { %v1782_v17 = vmax.f32 %v1460_v31, 0.0  ;;  %v1462_v21 = vadd.f32 %v1461_v9, %v3646_v48  ;;  %v1654_v10 = vpop.f32.mrf.mxu1  ;;  %v2037_v18 = vmul.f32 %v1911_v8, %v1781_v3  ;;  %v2153_v39 = vadd.f32 %v2152_v63, %v2035_v32 }
 0x2a4   :  { %v1784_v11 = vmax.f32 %v1653_v61, 0.0  ;;  %v2039_v25 = vmul.f32 %v1911_v8, %v1783_v43  ;;  %v1655_v36 = vadd.f32 %v1654_v10, %v3646_v48  ;;  %v1463_v47 = vpop.f32.mrf.mxu0  ;;  %v2116_v28 = vadd.f32 %v2115_v51, %v2034_v6  ;;  %v1923_v51 = vpop.permute.xlu0 %1922 }
 0x2a5   :  { %v2038_v15 = vmul.f32 %v1911_v8, %v1782_v17  ;;  %v1785_v41 = vmax.f32 %v1462_v21, 0.0  ;;  %v1464_v44 = vadd.f32 %v1463_v47, %v3646_v48  ;;  %v1656_v34 = vpop.f32.mrf.mxu1  ;;  %v2190_v16 = vadd.f32 %v2189_v49, %v2036_v59 }
 0x2a6   :  { %v2040_v42 = vmul.f32 %v1911_v8, %v1784_v11  ;;  %v1787_v40 = vmax.f32 %v1655_v36, 0.0  ;;  %v1657_v4 = vadd.f32 %v1656_v34, %v3646_v48  ;;  %v1467_v7 = vpop.f32.mrf.mxu0  ;;  %v2080_v46 = vadd.f32 %v2079_v60, %v2037_v18 }
 0x2a7   :  { %v1786_v14 = vmax.f32 %v1464_v44, 0.0  ;;  %v1468_v29 = vadd.f32 %v1467_v7, %v3656_v33  ;;  %v1660_v30 = vpop.f32.mrf.mxu1  ;;  %v2154_v45 = vadd.f32 %v2153_v39, %v2039_v25  ;;  %v2117_v27 = vadd.f32 %v2116_v28, %v2038_v15 }
 0x2a8   :  { %v1788_v62 = vmax.f32 %v1657_v4, 0.0  ;;  %v1661_v19 = vadd.f32 %v1660_v30, %v3656_v33  ;;  %v1469_v2 = vpop.f32.mrf.mxu0  ;;  %v2041_v20 = vmul.f32 %v1915_v22, %v1785_v41  ;;  %v2191_v58 = vadd.f32 %v2190_v16, %v2040_v42 }
 0x2a9   :  { %v1789_v5 = vmax.f32 %v1468_v29, 0.0  ;;  %v1470_v52 = vadd.f32 %v1469_v2, %v3656_v33  ;;  %v1662_v48 = vpop.f32.mrf.mxu1  ;;  %v2043_v24 = vmul.f32 %v1915_v22, %v1787_v40  ;;  %v2042_v23 = vmul.f32 %v1915_v22, %v1786_v14 }
 0x2aa   :  { %v1791_v12 = vmax.f32 %v1661_v19, 0.0  ;;  %v1663_v37 = vadd.f32 %v1662_v48, %v3656_v33  ;;  %v1471_v8 = vpop.f32.mrf.mxu0  ;;  %v2044_v57 = vmul.f32 %v1915_v22, %v1788_v62  ;;  %v2081_v38 = vadd.f32 %v2080_v46, %v2041_v20 }
 0x2ab   :  { %v1790_v53 = vmax.f32 %v1470_v52, 0.0  ;;  %v2045_v55 = vmul.f32 %v1919_v54, %v1789_v5  ;;  %v1472_v13 = vadd.f32 %v1471_v8, %v1121_v0  ;;  %v1664_v35 = vpop.f32.mrf.mxu1  ;;  %v2155_v32 = vadd.f32 %v2154_v45, %v2043_v24 }
 0x2ac   :  { %v1792_v63 = vmax.f32 %v1663_v37, 0.0  ;;  %v2047_v26 = vmul.f32 %v1919_v54, %v1791_v12  ;;  %v1665_v56 = vadd.f32 %v1664_v35, %v1121_v0  ;;  %v1473_v50 = vpop.f32.mrf.mxu0  ;;  %v2118_v9 = vadd.f32 %v2117_v27, %v2042_v23  ;;  %v2204_v37 = vpop.permute.xlu1 %2203 }
 0x2ad   :  { %v2046_v3 = vmul.f32 %v1919_v54, %v1790_v53  ;;  %v1793_v31 = vmax.f32 %v1472_v13, 0.0  ;;  %v1474_v1 = vadd.f32 %v1473_v50, %v1121_v0  ;;  %v1666_v49 = vpop.f32.mrf.mxu1  ;;  %v2082_v59 = vadd.f32 %v2081_v38, %v2045_v55 }
 0x2ae   :  { %v2048_v33 = vmul.f32 %v1919_v54, %v1792_v63  ;;  %v1795_v43 = vmax.f32 %v1665_v56, 0.0  ;;  %v1667_v61 = vadd.f32 %v1666_v49, %v1121_v0  ;;  %v2192_v21 = vadd.f32 %v2191_v58, %v2044_v57 }
 0x2af   :  { %v1794_v6 = vmax.f32 %v1474_v1, 0.0  ;;  %v2049_v17 = vmul.f32 %v1923_v51, %v1793_v31  ;;  %v2156_v11 = vadd.f32 %v2155_v32, %v2047_v26  ;;  %v2119_v25 = vadd.f32 %v2118_v9, %v2046_v3 }
 0x2b0   :  { %v1796_v10 = vmax.f32 %v1667_v61, 0.0  ;;  %v2051_v18 = vmul.f32 %v1923_v51, %v1795_v43  ;;  %v2193_v22 = vadd.f32 %v2192_v21, %v2048_v33  ;;  %v2465_v46 = vmov 1966171168  }
 0x2b1   :  { %v2050_v36 = vmul.f32 %v1923_v51, %v1794_v6  ;;  %v2083_v47 = vadd.f32 %v2082_v59, %v2049_v17  ;;  %v2217_v45 = vunpack.c.l.s4 %v2465_v46  ;;  %v2219_v62 = vlaneseq }
 0x2b2   :  { %v2052_v60 = vmul.f32 %v1923_v51, %v1796_v10  ;;  %v2157_v15 = vadd.f32 %v2156_v11, %v2051_v18 }
 0x2b3   :  { %v2084_v41 = vrot.slane %v2083_v47, 4  ;;  %v2120_v44 = vadd.f32 %v2119_v25, %v2050_v36  ;;  %v2218_v24 = vunpack.c.0.s8 %v2217_v45  ;;  %v2220_v12 = vshrl.u32 %v2219_v62, 7 }
 0x2b4   :  { %v2158_v34 = vrot.slane %v2157_v15, 4  ;;  %v2194_v39 = vadd.f32 %v2193_v22, %v2052_v60  ;;  %vm2241_vm1 = vcmp.lt.s32.totalorder %v2219_v62, 512 }
 0x2b5   :  { %v2085_v42 = vadd.f32 %v2084_v41, %v2083_v47  ;;  %v2121_v40 = vrot.slane %v2120_v44, 4  ;;  %v2221_v35 = vsub.s32 %v2218_v24, %v2220_v12 }
 0x2b6   :  { %v2159_v4 = vadd.f32 %v2158_v34, %v2157_v15  ;;  %v2195_v7 = vrot.slane %v2194_v39, 4 }
 0x2b7   :  { %v2122_v28 = vadd.f32 %v2121_v40, %v2120_v44  ;;  %v2086_v16 = vrot.slane %v2085_v42, 2 }
 0x2b8   :  { %v2196_v14 = vadd.f32 %v2195_v7, %v2194_v39  ;;  %v2160_v29 = vrot.slane %v2159_v4, 2 }
 0x2b9   :  { %v2087_v30 = vadd.f32 %v2086_v16, %v2085_v42  ;;  %v2123_v0 = vrot.slane %v2122_v28, 2 }
 0x2ba   :  { %v2161_v19 = vadd.f32 %v2160_v29, %v2159_v4  ;;  %v2197_v2 = vrot.slane %v2196_v14, 2 }
 0x2bb   :  { %v2088_v27 = vrot.slane %v2087_v30, 1  ;;  %v2124_v20 = vadd.f32 %v2123_v0, %v2122_v28 }
 0x2bc   :  { %v2162_v5 = vrot.slane %v2161_v19, 1  ;;  %v2198_v52 = vadd.f32 %v2197_v2, %v2196_v14 }
 0x2bd   :  { %v2089_v48 = vadd.f32 %v2088_v27, %v2087_v30  ;;  %v2125_v58 = vrot.slane %v2124_v20, 1 }
 0x2be   :  { %v2163_v54 = vadd.f32 %v2162_v5, %v2161_v19  ;;  %v2199_v8 = vrot.slane %v2198_v52, 1 }
 0x2bf   :  { %v2126_v23 = vadd.f32 %v2125_v58, %v2124_v20  ;;  %v2206_v55 = vadd.f32 %v2204_v37, %v2089_v48 }
 0x2c0   :  { %v2200_v53 = vadd.f32 %v2199_v8, %v2198_v52  ;;  %v2208_v57 = vadd.f32 %v2204_v37, %v2163_v54 }
 0x2c1   :  { %v2207_v13 = vadd.f32 %v2204_v37, %v2126_v23 }
 0x2c2   :  { %v2209_v63 = vadd.f32 %v2204_v37, %v2200_v53 }
 0x2c3   :  { %v2214_v26 = vcombine.low %v2206_v55, %v2207_v13 }
 0x2c4   :  { %v2215_v56 = vcombine.low %v2208_v57, %v2209_v63 }
 0x2c5   :  { %v2222_v50 = vrot.slane %v2214_v26, %v2221_v35 }
 0x2c6   :  { %v2229_v51 = vrot.slane %v2215_v56, %v2221_v35 }
 0x2c8   :  { %v2230_v38 = vcombine.low %v2222_v50, %v2229_v51 }
 0x2ca   :  { %v2237_v3 = vrot.slane %v2230_v38, %v2221_v35 }
 0x2cc   :  { %2243 = vst.msk [vmem:[#allocation2] sm:$0xf] %vm2241_vm1, %v2237_v3 }
 0x2cd   :  { %2450 = shalt.err (!%p2447_p4)
}
 0x2ce   :  { %2253 = dma.vmem_to_hbm [thread:$0]  %s2251_s12, 64, %s3687_s4, [#allocation3]  }
 0x2cf   :  { %2459 = dma.done.wait [#allocation3], 64  }
 0x2d0   :  { %2460 = vsyncadd [#allocation3], 4294967232 }
 0x2d1   :  { %2257 = vsyncpa [#allocation3], 1 }

</bundles_post_ra>
